<compile_context>
chip_gen: v7x
topology: tpu7x:2x2x1
jax: 0.10.0
libtpu: 0.0.40
codegen_flags: <defaults>
</compile_context>

<pallas_src>
import jax
import jax.numpy as jnp
from jax.experimental import pallas as pl
from jax.experimental.pallas import tpu as pltpu


# ----------------------------------------------------------------------------
# Pallas kernel: the full GAE_RNN.forward() sequence (grid over time blocks)
# ----------------------------------------------------------------------------
def _gae_rnn_seq_kernel(
    a_ref, phix_ref,                 # (TB, N, N) bf16 adjacencies, (N, H) f32 phi_x(x)
    w_c1_ref, b_c1_ref,              # VGAE.c1 : GCN(2h -> h)
    w_mean_ref, b_mean_ref,          # VGAE.mean : GCN(h -> z)
    w_phiz_ref, b_phiz_ref,          # phi_z : Linear(z, h) + ReLU
    w_xg_ref, b_xg_ref,              # packed GRU x-side gates  (2H, 3H) / (1, 3H)
    w_hzr_ref, b_hzr_ref,            # packed GRU h-side z,r    (H, 2H)  / (1, 2H)
    w_hh_ref, b_hh_ref,              # GRU candidate h-side     (H, H)   / (1, H)
    z_out_ref, h_out_ref,
    h_scr,                           # VMEM scratch: recurrent state (N, H) f32
):
    s = pl.program_id(0)
    n_s = pl.num_programs(0)
    TB = a_ref.shape[0]
    H = h_scr.shape[1]
    f32 = jnp.float32
    bf16 = jnp.bfloat16

    @pl.when(s == 0)
    def _():
        h_scr[...] = jnp.zeros_like(h_scr)

    def mm(u, v):
        return jnp.dot(u, v, preferred_element_type=f32)

    phix_bf = phix_ref[...].astype(bf16)      # (N, H), loop-invariant

    h = h_scr[...]                            # (N, H) f32 state entering this block
    for tb in range(TB):                      # static unroll over the time batch
        a = a_ref[tb]                         # (N, N) bf16 normalized adjacency

        # --- fused adjacency propagation: A @ [phix | h] in one MXU pass -----
        cat1 = jnp.concatenate([phix_bf, h.astype(bf16)], axis=1)   # (N, 2H) bf16
        a_cat1 = mm(a, cat1)                                        # (N, 2H) f32
        a_phix = a_cat1[:, 0:H]
        a_h = a_cat1[:, H:2 * H]

        # --- VGAE encoder on concat([phix, h]).  In the PyTorch module
        # `if self.eval:` is always truthy, so z = mean (kld = 0). -------------
        enc1 = jnp.maximum(mm(a_cat1, w_c1_ref[...]) + b_c1_ref[...], 0.0)
        z = mm(a, mm(enc1, w_mean_ref[...]).astype(bf16)) + b_mean_ref[...]

        # --- phi_z : Linear + ReLU, then its adjacency propagation -----------
        phiz = jnp.maximum(mm(z, w_phiz_ref[...]) + b_phiz_ref[...], 0.0)
        a_phiz = mm(a, phiz.astype(bf16))                           # (N, H) f32

        # --- GraphGRU.forward_once with h_in = concat([phix, phiz]) ----------
        # x-side gates: one (N, 2H) @ (2H, 3H) matmul; columns: [z | r | h~].
        xg = mm(jnp.concatenate([a_phix, a_phiz], axis=1), w_xg_ref[...]) + b_xg_ref[...]
        # h-side z/r gates: one (N, H) @ (H, 2H) matmul; columns: [z | r].
        hzr = mm(a_h, w_hzr_ref[...]) + b_hzr_ref[...]

        z_g = jax.nn.sigmoid(xg[:, 0:H] + hzr[:, 0:H])
        r_g = jax.nn.sigmoid(xg[:, H:2 * H] + hzr[:, H:2 * H])
        hh = mm(mm(a, (r_g * h).astype(bf16)), w_hh_ref[...]) + b_hh_ref[...]
        h_hat = jnp.tanh(xg[:, 2 * H:3 * H] + hh)

        # Reproduces the PyTorch quirk `z_g * h[i]` with i == 0 (row 0 of h,
        # broadcast across all nodes) rather than the standard `z_g * h`.
        h = z_g * h[0:1, :] + (1.0 - z_g) * h_hat

        z_out_ref[tb] = z

    h_scr[...] = h                            # carry state to the next grid step

    @pl.when(s == n_s - 1)
    def _():
        h_out_ref[...] = h


# ----------------------------------------------------------------------------
# Wrapper: one pallas_call for the whole sequence
# ----------------------------------------------------------------------------
def _pick_time_batch(t_total, max_tb=8):
    """Largest divisor of t_total that is <= max_tb (amortizes grid-step overhead)."""
    for cand in range(min(max_tb, t_total), 0, -1):
        if t_total % cand == 0:
            return cand
    return 1


def _gae_rnn_forward_impl(a_stack, x, params):
    T, N, _ = a_stack.shape
    H = params["w_hz"].shape[0]
    Z = params["w_mean"].shape[1]
    TB = _pick_time_batch(T)

    # Loop-invariant phi_x hoisted out of the kernel (computed once, plain JAX).
    phix = jax.nn.relu(x @ params["w_phix"] + params["b_phix"]).astype(jnp.float32)

    # Pre-pack GRU gate weights (done once, outside the kernel).
    w_xg = jnp.concatenate([params["w_xz"], params["w_xr"], params["w_xh"]], axis=1)
    b_xg = jnp.concatenate([params["b_xz"], params["b_xr"], params["b_xh"]], axis=1)
    w_hzr = jnp.concatenate([params["w_hz"], params["w_hr"]], axis=1)
    b_hzr = jnp.concatenate([params["b_hz"], params["b_hr"]], axis=1)

    # The (T, N, N) adjacency stream dominates HBM/VMEM traffic: stream it in bf16.
    a_bf16 = a_stack.astype(jnp.bfloat16)

    args = (
        a_bf16, phix,
        params["w_c1"], params["b_c1"],
        params["w_mean"], params["b_mean"],
        params["w_phiz"], params["b_phiz"],
        w_xg, b_xg, w_hzr, b_hzr,
        params["w_hh"], params["b_hh"],
    )

    def const_spec(shape):
        nd = len(shape)
        # TODO(synk): on v7x, pipeline_mode=pl.Buffered(1) here would halve the
        # VMEM residency of these never-changing weight/bias blocks.
        return pl.BlockSpec(shape, lambda s, _nd=nd: (0,) * _nd)

    in_specs = [pl.BlockSpec((TB, N, N), lambda s: (s, 0, 0))]
    in_specs += [const_spec(arr.shape) for arr in args[1:]]

    zs, h_out = pl.pallas_call(
        _gae_rnn_seq_kernel,
        out_shape=(jax.ShapeDtypeStruct((T, N, Z), jnp.float32),
                   jax.ShapeDtypeStruct((N, H), jnp.float32)),
        grid_spec=pltpu.PrefetchScalarGridSpec(
            num_scalar_prefetch=0,
            grid=(T // TB,),
            in_specs=in_specs,
            out_specs=(pl.BlockSpec((TB, N, Z), lambda s: (s, 0, 0)),
                       pl.BlockSpec((N, H), lambda s: (0, 0))),
            scratch_shapes=[pltpu.VMEM((N, H), jnp.float32)],
        ),
        compiler_params=pltpu.CompilerParams(
            dimension_semantics=("arbitrary",),   # sequential recurrence over time
            vmem_limit_bytes=48 * 1024 * 1024),   # explicit budget (v7x has 64 MiB)
    )(*args)
    return zs, h_out


_gae_rnn_forward_jit = jax.jit(_gae_rnn_forward_impl)


def gae_rnn_forward(x, a_hats, params, h_dim):
    """GAE_RNN.forward over a list of snapshots. Returns (zs: (T,N,Z), h_final)."""
    del h_dim  # implied by params
    a_stack = jnp.stack(a_hats, axis=0)
    return _gae_rnn_forward_jit(a_stack, x, params)


# ----------------------------------------------------------------------------
# Glue: normalized adjacency + deterministic parameter init + JAX reference
# ----------------------------------------------------------------------------
def build_norm_adj(edge_index, num_nodes):
    """Dense GCN-normalized adjacency with self loops: D^-1/2 (A+I) D^-1/2."""
    src, dst = edge_index
    a = jnp.zeros((num_nodes, num_nodes), jnp.float32)
    a = a.at[dst, src].set(1.0)
    a = jnp.maximum(a, jnp.eye(num_nodes, dtype=jnp.float32))
    deg = a.sum(axis=1)
    dinv = jnp.where(deg > 0, 1.0 / jnp.sqrt(deg), 0.0)
    return a * dinv[:, None] * dinv[None, :]


def init_params(key, x_dim, h_dim, z_dim):
    def glorot(k, shape):
        lim = jnp.sqrt(6.0 / (shape[0] + shape[1]))
        return jax.random.uniform(k, shape, jnp.float32, -lim, lim)

    names_shapes = [
        ("w_phix", (x_dim, h_dim)), ("b_phix", (1, h_dim)),
        ("w_c1", (2 * h_dim, h_dim)), ("b_c1", (1, h_dim)),
        ("w_mean", (h_dim, z_dim)), ("b_mean", (1, z_dim)),
        ("w_phiz", (z_dim, h_dim)), ("b_phiz", (1, h_dim)),
        ("w_xz", (2 * h_dim, h_dim)), ("b_xz", (1, h_dim)),
        ("w_hz", (h_dim, h_dim)), ("b_hz", (1, h_dim)),
        ("w_xr", (2 * h_dim, h_dim)), ("b_xr", (1, h_dim)),
        ("w_hr", (h_dim, h_dim)), ("b_hr", (1, h_dim)),
        ("w_xh", (2 * h_dim, h_dim)), ("b_xh", (1, h_dim)),
        ("w_hh", (h_dim, h_dim)), ("b_hh", (1, h_dim)),
    ]
    keys = jax.random.split(key, len(names_shapes))
    params = {}
    for (name, shape), k in zip(names_shapes, keys):
        if name.startswith("w_"):
            params[name] = glorot(k, shape)
        else:
            params[name] = 0.01 * jax.random.normal(k, shape, jnp.float32)
    return params


def ref_step(a, x, h, p):
    """Pure-JAX f32 reference for one snapshot (matches PyTorch forward_once)."""
    relu = jax.nn.relu
    phix = relu(x @ p["w_phix"] + p["b_phix"])
    gcn_x = jnp.concatenate([phix, h], axis=1)
    enc1 = relu(a @ (gcn_x @ p["w_c1"]) + p["b_c1"])
    z = a @ (enc1 @ p["w_mean"]) + p["b_mean"]
    phiz = relu(z @ p["w_phiz"] + p["b_phiz"])
    h_in = jnp.concatenate([phix, phiz], axis=1)

    def gcn(feat, w, b):
        return a @ (feat @ w) + b

    z_g = jax.nn.sigmoid(gcn(h_in, p["w_xz"], p["b_xz"]) + gcn(h, p["w_hz"], p["b_hz"]))
    r_g = jax.nn.sigmoid(gcn(h_in, p["w_xr"], p["b_xr"]) + gcn(h, p["w_hr"], p["b_hr"]))
    h_hat = jnp.tanh(gcn(h_in, p["w_xh"], p["b_xh"]) + gcn(r_g * h, p["w_hh"], p["b_hh"]))
    h_out = z_g * h[0:1] + (1.0 - z_g) * h_hat
    return h_out, z


# ----------------------------------------------------------------------------
if __name__ == "__main__":
    key = jax.random.PRNGKey(0)
    N, X_DIM, H_DIM, Z_DIM, T = 16, 8, 32, 16, 3

    k_x, k_p, k_e = jax.random.split(key, 3)
    x = jax.random.normal(k_x, (N, X_DIM), jnp.float32)
    params = init_params(k_p, X_DIM, H_DIM, Z_DIM)

    # T random (symmetrized) edge lists -> dense normalized adjacencies.
    a_hats = []
    for t in range(T):
        ke = jax.random.fold_in(k_e, t)
        e = jax.random.randint(ke, (2, 24), 0, N)
        ei = jnp.concatenate([e, e[::-1]], axis=1)   # undirected
        a_hats.append(build_norm_adj(ei, N))

    zs, h_final = gae_rnn_forward(x, a_hats, params, H_DIM)
    jax.block_until_ready(zs)
    jax.block_until_ready(h_final)

    # Correctness check against a pure-f32 JAX reference of the PyTorch semantics.
    h_ref = jnp.zeros((N, H_DIM), jnp.float32)
    zs_ref = []
    for a_hat in a_hats:
        h_ref, z_ref = ref_step(a_hat, x, h_ref, params)
        zs_ref.append(z_ref)
    zs_ref = jnp.stack(zs_ref)

    assert zs.shape == (T, N, Z_DIM)
    # Tolerance loosened vs. a pure-f32 kernel: the adjacency matmuls run in
    # bf16 (f32 accumulation), giving ~0.5-1% relative error on z / h.
    assert jnp.allclose(zs, zs_ref, atol=3e-2, rtol=3e-2)
    assert jnp.allclose(h_final, h_ref, atol=3e-2, rtol=3e-2)

    print("KERNEL_OK")
</pallas_src>

<mosaic_0001>
module attributes {stable_mosaic.version = 11 : i64} {
  func.func @_gae_rnn_seq_kernel(%arg0: i32, %arg1: memref<3x16x16xbf16, #tpu.memory_space<vmem>>, %arg2: memref<16x32xf32, #tpu.memory_space<vmem>>, %arg3: memref<64x32xf32, #tpu.memory_space<vmem>>, %arg4: memref<1x32xf32, #tpu.memory_space<vmem>>, %arg5: memref<32x16xf32, #tpu.memory_space<vmem>>, %arg6: memref<1x16xf32, #tpu.memory_space<vmem>>, %arg7: memref<16x32xf32, #tpu.memory_space<vmem>>, %arg8: memref<1x32xf32, #tpu.memory_space<vmem>>, %arg9: memref<64x96xf32, #tpu.memory_space<vmem>>, %arg10: memref<1x96xf32, #tpu.memory_space<vmem>>, %arg11: memref<32x64xf32, #tpu.memory_space<vmem>>, %arg12: memref<1x64xf32, #tpu.memory_space<vmem>>, %arg13: memref<32x32xf32, #tpu.memory_space<vmem>>, %arg14: memref<1x32xf32, #tpu.memory_space<vmem>>, %arg15: memref<3x16x16xf32, #tpu.memory_space<vmem>>, %arg16: memref<16x32xf32, #tpu.memory_space<vmem>>, %arg17: memref<16x32xf32, #tpu.memory_space<vmem>>) attributes {dimension_semantics = [#tpu.dimension_semantics<arbitrary>], iteration_bounds = array<i64: 1>, scalar_prefetch = 0 : i64, scratch_operands = 1 : i64, tpu.core_type = #tpu.core_type<tc>, window_params = [{transform_indices = @transform_0, window_bounds = array<i64: 3, 16, 16>}, {pipeline_mode = #tpu.pipeline_mode<synchronous>, transform_indices = @transform_1, window_bounds = array<i64: 16, 32>}, {pipeline_mode = #tpu.pipeline_mode<synchronous>, transform_indices = @transform_2, window_bounds = array<i64: 64, 32>}, {pipeline_mode = #tpu.pipeline_mode<synchronous>, transform_indices = @transform_3, window_bounds = array<i64: 1, 32>}, {pipeline_mode = #tpu.pipeline_mode<synchronous>, transform_indices = @transform_4, window_bounds = array<i64: 32, 16>}, {pipeline_mode = #tpu.pipeline_mode<synchronous>, transform_indices = @transform_5, window_bounds = array<i64: 1, 16>}, {pipeline_mode = #tpu.pipeline_mode<synchronous>, transform_indices = @transform_6, window_bounds = array<i64: 16, 32>}, {pipeline_mode = #tpu.pipeline_mode<synchronous>, transform_indices = @transform_7, window_bounds = array<i64: 1, 32>}, {pipeline_mode = #tpu.pipeline_mode<synchronous>, transform_indices = @transform_8, window_bounds = array<i64: 64, 96>}, {pipeline_mode = #tpu.pipeline_mode<synchronous>, transform_indices = @transform_9, window_bounds = array<i64: 1, 96>}, {pipeline_mode = #tpu.pipeline_mode<synchronous>, transform_indices = @transform_10, window_bounds = array<i64: 32, 64>}, {pipeline_mode = #tpu.pipeline_mode<synchronous>, transform_indices = @transform_11, window_bounds = array<i64: 1, 64>}, {pipeline_mode = #tpu.pipeline_mode<synchronous>, transform_indices = @transform_12, window_bounds = array<i64: 32, 32>}, {pipeline_mode = #tpu.pipeline_mode<synchronous>, transform_indices = @transform_13, window_bounds = array<i64: 1, 32>}, {transform_indices = @transform_14, window_bounds = array<i64: 3, 16, 16>}, {pipeline_mode = #tpu.pipeline_mode<synchronous>, transform_indices = @transform_15, window_bounds = array<i64: 16, 32>}]} {
    %c0_i32 = arith.constant 0 : i32
    %0 = arith.cmpi eq, %arg0, %c0_i32 : i32
    %1 = arith.extui %0 : i1 to i32
    %c0_i32_0 = arith.constant 0 : i32
    %2 = arith.cmpi ne, %1, %c0_i32_0 : i32
    scf.if %2 {
      %cst_140 = arith.constant 0.000000e+00 : f32
      %244 = vector.broadcast %cst_140 : f32 to vector<16x32xf32>
      %c0_141 = arith.constant 0 : index
      %c0_142 = arith.constant 0 : index
      %245 = vector.load %arg17[%c0_141, %c0_142] : memref<16x32xf32, #tpu.memory_space<vmem>>, vector<16x32xf32>
      tpu.vector_store %arg17[%c0_141, %c0_142], %244 {strides = array<i32>} : memref<16x32xf32, #tpu.memory_space<vmem>>, vector<16x32xf32>,
    } else {
    }
    %c0 = arith.constant 0 : index
    %c0_1 = arith.constant 0 : index
    %3 = vector.load %arg2[%c0, %c0_1] : memref<16x32xf32, #tpu.memory_space<vmem>>, vector<16x32xf32>
    %4 = arith.truncf %3 : vector<16x32xf32> to vector<16x32xbf16>
    %c0_2 = arith.constant 0 : index
    %c0_3 = arith.constant 0 : index
    %5 = vector.load %arg17[%c0_2, %c0_3] : memref<16x32xf32, #tpu.memory_space<vmem>>, vector<16x32xf32>
    %c0_4 = arith.constant 0 : index
    %c0_5 = arith.constant 0 : index
    %c0_6 = arith.constant 0 : index
    %6 = vector.load %arg1[%c0_4, %c0_5, %c0_6] : memref<3x16x16xbf16, #tpu.memory_space<vmem>>, vector<1x16x16xbf16>
    %7 = vector.shape_cast %6 : vector<1x16x16xbf16> to vector<16x16xbf16>
    %8 = arith.truncf %5 : vector<16x32xf32> to vector<16x32xbf16>
    %9 = tpu.concatenate %4, %8 in 1 : vector<16x32xbf16>, vector<16x32xbf16> -> vector<16x64xbf16>
    %cst = arith.constant dense<0.000000e+00> : vector<16x64xf32>
    %10 = tpu.matmul %7, %9, %cst {dimension_numbers = #tpu.dot_dimension_numbers<[1], [0], [0], [1], [0, 0, 1, 1], [], []>} : vector<16x16xbf16>, vector<16x64xbf16>, vector<16x64xf32> -> vector<16x64xf32>
    %11 = vector.extract_strided_slice %10 {offsets = [0, 0], sizes = [16, 32], strides = [1, 1]} : vector<16x64xf32> to vector<16x32xf32>
    %12 = vector.extract_strided_slice %10 {offsets = [0, 32], sizes = [16, 32], strides = [1, 1]} : vector<16x64xf32> to vector<16x32xf32>
    %c0_7 = arith.constant 0 : index
    %c0_8 = arith.constant 0 : index
    %13 = vector.load %arg3[%c0_7, %c0_8] : memref<64x32xf32, #tpu.memory_space<vmem>>, vector<64x32xf32>
    %cst_9 = arith.constant dense<0.000000e+00> : vector<16x32xf32>
    %14 = tpu.matmul %10, %13, %cst_9 {dimension_numbers = #tpu.dot_dimension_numbers<[1], [0], [0], [1], [0, 0, 1, 1], [], []>} : vector<16x64xf32>, vector<64x32xf32>, vector<16x32xf32> -> vector<16x32xf32>
    %c0_10 = arith.constant 0 : index
    %c0_11 = arith.constant 0 : index
    %15 = vector.load %arg4[%c0_10, %c0_11] : memref<1x32xf32, #tpu.memory_space<vmem>>, vector<1x32xf32>
    %16 = vector.broadcast %15 : vector<1x32xf32> to vector<16x32xf32>
    %17 = arith.addf %14, %16 : vector<16x32xf32>
    %cst_12 = arith.constant 0.000000e+00 : f32
    %18 = vector.broadcast %cst_12 : f32 to vector<16x32xf32>
    %19 = arith.maximumf %17, %18 : vector<16x32xf32>
    %c0_13 = arith.constant 0 : index
    %c0_14 = arith.constant 0 : index
    %20 = vector.load %arg5[%c0_13, %c0_14] : memref<32x16xf32, #tpu.memory_space<vmem>>, vector<32x16xf32>
    %cst_15 = arith.constant dense<0.000000e+00> : vector<16x16xf32>
    %21 = tpu.matmul %19, %20, %cst_15 {dimension_numbers = #tpu.dot_dimension_numbers<[1], [0], [0], [1], [0, 0, 1, 1], [], []>} : vector<16x32xf32>, vector<32x16xf32>, vector<16x16xf32> -> vector<16x16xf32>
    %22 = arith.truncf %21 : vector<16x16xf32> to vector<16x16xbf16>
    %cst_16 = arith.constant dense<0.000000e+00> : vector<16x16xf32>
    %23 = tpu.matmul %7, %22, %cst_16 {dimension_numbers = #tpu.dot_dimension_numbers<[1], [0], [0], [1], [0, 0, 1, 1], [], []>} : vector<16x16xbf16>, vector<16x16xbf16>, vector<16x16xf32> -> vector<16x16xf32>
    %c0_17 = arith.constant 0 : index
    %c0_18 = arith.constant 0 : index
    %24 = vector.load %arg6[%c0_17, %c0_18] : memref<1x16xf32, #tpu.memory_space<vmem>>, vector<1x16xf32>
    %25 = vector.broadcast %24 : vector<1x16xf32> to vector<16x16xf32>
    %26 = arith.addf %23, %25 : vector<16x16xf32>
    %c0_19 = arith.constant 0 : index
    %c0_20 = arith.constant 0 : index
    %27 = vector.load %arg7[%c0_19, %c0_20] : memref<16x32xf32, #tpu.memory_space<vmem>>, vector<16x32xf32>
    %cst_21 = arith.constant dense<0.000000e+00> : vector<16x32xf32>
    %28 = tpu.matmul %26, %27, %cst_21 {dimension_numbers = #tpu.dot_dimension_numbers<[1], [0], [0], [1], [0, 0, 1, 1], [], []>} : vector<16x16xf32>, vector<16x32xf32>, vector<16x32xf32> -> vector<16x32xf32>
    %c0_22 = arith.constant 0 : index
    %c0_23 = arith.constant 0 : index
    %29 = vector.load %arg8[%c0_22, %c0_23] : memref<1x32xf32, #tpu.memory_space<vmem>>, vector<1x32xf32>
    %30 = vector.broadcast %29 : vector<1x32xf32> to vector<16x32xf32>
    %31 = arith.addf %28, %30 : vector<16x32xf32>
    %cst_24 = arith.constant 0.000000e+00 : f32
    %32 = vector.broadcast %cst_24 : f32 to vector<16x32xf32>
    %33 = arith.maximumf %31, %32 : vector<16x32xf32>
    %34 = arith.truncf %33 : vector<16x32xf32> to vector<16x32xbf16>
    %cst_25 = arith.constant dense<0.000000e+00> : vector<16x32xf32>
    %35 = tpu.matmul %7, %34, %cst_25 {dimension_numbers = #tpu.dot_dimension_numbers<[1], [0], [0], [1], [0, 0, 1, 1], [], []>} : vector<16x16xbf16>, vector<16x32xbf16>, vector<16x32xf32> -> vector<16x32xf32>
    %36 = tpu.concatenate %11, %35 in 1 : vector<16x32xf32>, vector<16x32xf32> -> vector<16x64xf32>
    %c0_26 = arith.constant 0 : index
    %c0_27 = arith.constant 0 : index
    %37 = vector.load %arg9[%c0_26, %c0_27] : memref<64x96xf32, #tpu.memory_space<vmem>>, vector<64x96xf32>
    %cst_28 = arith.constant dense<0.000000e+00> : vector<16x96xf32>
    %38 = tpu.matmul %36, %37, %cst_28 {dimension_numbers = #tpu.dot_dimension_numbers<[1], [0], [0], [1], [0, 0, 1, 1], [], []>} : vector<16x64xf32>, vector<64x96xf32>, vector<16x96xf32> -> vector<16x96xf32>
    %c0_29 = arith.constant 0 : index
    %c0_30 = arith.constant 0 : index
    %39 = vector.load %arg10[%c0_29, %c0_30] : memref<1x96xf32, #tpu.memory_space<vmem>>, vector<1x96xf32>
    %40 = vector.broadcast %39 : vector<1x96xf32> to vector<16x96xf32>
    %41 = arith.addf %38, %40 : vector<16x96xf32>
    %c0_31 = arith.constant 0 : index
    %c0_32 = arith.constant 0 : index
    %42 = vector.load %arg11[%c0_31, %c0_32] : memref<32x64xf32, #tpu.memory_space<vmem>>, vector<32x64xf32>
    %cst_33 = arith.constant dense<0.000000e+00> : vector<16x64xf32>
    %43 = tpu.matmul %12, %42, %cst_33 {dimension_numbers = #tpu.dot_dimension_numbers<[1], [0], [0], [1], [0, 0, 1, 1], [], []>} : vector<16x32xf32>, vector<32x64xf32>, vector<16x64xf32> -> vector<16x64xf32>
    %c0_34 = arith.constant 0 : index
    %c0_35 = arith.constant 0 : index
    %44 = vector.load %arg12[%c0_34, %c0_35] : memref<1x64xf32, #tpu.memory_space<vmem>>, vector<1x64xf32>
    %45 = vector.broadcast %44 : vector<1x64xf32> to vector<16x64xf32>
    %46 = arith.addf %43, %45 : vector<16x64xf32>
    %47 = vector.extract_strided_slice %41 {offsets = [0, 0], sizes = [16, 32], strides = [1, 1]} : vector<16x96xf32> to vector<16x32xf32>
    %48 = vector.extract_strided_slice %46 {offsets = [0, 0], sizes = [16, 32], strides = [1, 1]} : vector<16x64xf32> to vector<16x32xf32>
    %49 = arith.addf %47, %48 : vector<16x32xf32>
    %50 = arith.negf %49 : vector<16x32xf32>
    %51 = math.exp %50 : vector<16x32xf32>
    %cst_36 = arith.constant 1.000000e+00 : f32
    %52 = vector.broadcast %cst_36 : f32 to vector<16x32xf32>
    %53 = arith.addf %52, %51 : vector<16x32xf32>
    %54 = arith.divf %52, %53 : vector<16x32xf32>
    %55 = vector.extract_strided_slice %41 {offsets = [0, 32], sizes = [16, 32], strides = [1, 1]} : vector<16x96xf32> to vector<16x32xf32>
    %56 = vector.extract_strided_slice %46 {offsets = [0, 32], sizes = [16, 32], strides = [1, 1]} : vector<16x64xf32> to vector<16x32xf32>
    %57 = arith.addf %55, %56 : vector<16x32xf32>
    %58 = arith.negf %57 : vector<16x32xf32>
    %59 = math.exp %58 : vector<16x32xf32>
    %cst_37 = arith.constant 1.000000e+00 : f32
    %60 = vector.broadcast %cst_37 : f32 to vector<16x32xf32>
    %61 = arith.addf %60, %59 : vector<16x32xf32>
    %62 = arith.divf %60, %61 : vector<16x32xf32>
    %63 = arith.mulf %62, %5 : vector<16x32xf32>
    %64 = arith.truncf %63 : vector<16x32xf32> to vector<16x32xbf16>
    %cst_38 = arith.constant dense<0.000000e+00> : vector<16x32xf32>
    %65 = tpu.matmul %7, %64, %cst_38 {dimension_numbers = #tpu.dot_dimension_numbers<[1], [0], [0], [1], [0, 0, 1, 1], [], []>} : vector<16x16xbf16>, vector<16x32xbf16>, vector<16x32xf32> -> vector<16x32xf32>
    %c0_39 = arith.constant 0 : index
    %c0_40 = arith.constant 0 : index
    %66 = vector.load %arg13[%c0_39, %c0_40] : memref<32x32xf32, #tpu.memory_space<vmem>>, vector<32x32xf32>
    %cst_41 = arith.constant dense<0.000000e+00> : vector<16x32xf32>
    %67 = tpu.matmul %65, %66, %cst_41 {dimension_numbers = #tpu.dot_dimension_numbers<[1], [0], [0], [1], [0, 0, 1, 1], [], []>} : vector<16x32xf32>, vector<32x32xf32>, vector<16x32xf32> -> vector<16x32xf32>
    %c0_42 = arith.constant 0 : index
    %c0_43 = arith.constant 0 : index
    %68 = vector.load %arg14[%c0_42, %c0_43] : memref<1x32xf32, #tpu.memory_space<vmem>>, vector<1x32xf32>
    %69 = vector.broadcast %68 : vector<1x32xf32> to vector<16x32xf32>
    %70 = arith.addf %67, %69 : vector<16x32xf32>
    %71 = vector.extract_strided_slice %41 {offsets = [0, 64], sizes = [16, 32], strides = [1, 1]} : vector<16x96xf32> to vector<16x32xf32>
    %72 = arith.addf %71, %70 : vector<16x32xf32>
    %73 = math.tanh %72 : vector<16x32xf32>
    %74 = vector.extract_strided_slice %5 {offsets = [0, 0], sizes = [1, 32], strides = [1, 1]} : vector<16x32xf32> to vector<1x32xf32>
    %75 = vector.broadcast %74 : vector<1x32xf32> to vector<16x32xf32>
    %76 = arith.mulf %54, %75 : vector<16x32xf32>
    %cst_44 = arith.constant 1.000000e+00 : f32
    %77 = vector.broadcast %cst_44 : f32 to vector<16x32xf32>
    %78 = arith.subf %77, %54 : vector<16x32xf32>
    %79 = arith.mulf %78, %73 : vector<16x32xf32>
    %80 = arith.addf %76, %79 : vector<16x32xf32>
    %c0_45 = arith.constant 0 : index
    %c0_46 = arith.constant 0 : index
    %c0_47 = arith.constant 0 : index
    %81 = vector.load %arg15[%c0_45, %c0_46, %c0_47] : memref<3x16x16xf32, #tpu.memory_space<vmem>>, vector<1x16x16xf32>
    %82 = vector.shape_cast %81 : vector<1x16x16xf32> to vector<16x16xf32>
    %83 = vector.shape_cast %26 : vector<16x16xf32> to vector<1x16x16xf32>
    tpu.vector_store %arg15[%c0_45, %c0_46, %c0_47], %83 {strides = array<i32>} : memref<3x16x16xf32, #tpu.memory_space<vmem>>, vector<1x16x16xf32>,
    %c1 = arith.constant 1 : index
    %c0_48 = arith.constant 0 : index
    %c0_49 = arith.constant 0 : index
    %84 = vector.load %arg1[%c1, %c0_48, %c0_49] : memref<3x16x16xbf16, #tpu.memory_space<vmem>>, vector<1x16x16xbf16>
    %85 = vector.shape_cast %84 : vector<1x16x16xbf16> to vector<16x16xbf16>
    %86 = arith.truncf %80 : vector<16x32xf32> to vector<16x32xbf16>
    %87 = tpu.concatenate %4, %86 in 1 : vector<16x32xbf16>, vector<16x32xbf16> -> vector<16x64xbf16>
    %cst_50 = arith.constant dense<0.000000e+00> : vector<16x64xf32>
    %88 = tpu.matmul %85, %87, %cst_50 {dimension_numbers = #tpu.dot_dimension_numbers<[1], [0], [0], [1], [0, 0, 1, 1], [], []>} : vector<16x16xbf16>, vector<16x64xbf16>, vector<16x64xf32> -> vector<16x64xf32>
    %89 = vector.extract_strided_slice %88 {offsets = [0, 0], sizes = [16, 32], strides = [1, 1]} : vector<16x64xf32> to vector<16x32xf32>
    %90 = vector.extract_strided_slice %88 {offsets = [0, 32], sizes = [16, 32], strides = [1, 1]} : vector<16x64xf32> to vector<16x32xf32>
    %c0_51 = arith.constant 0 : index
    %c0_52 = arith.constant 0 : index
    %91 = vector.load %arg3[%c0_51, %c0_52] : memref<64x32xf32, #tpu.memory_space<vmem>>, vector<64x32xf32>
    %cst_53 = arith.constant dense<0.000000e+00> : vector<16x32xf32>
    %92 = tpu.matmul %88, %91, %cst_53 {dimension_numbers = #tpu.dot_dimension_numbers<[1], [0], [0], [1], [0, 0, 1, 1], [], []>} : vector<16x64xf32>, vector<64x32xf32>, vector<16x32xf32> -> vector<16x32xf32>
    %c0_54 = arith.constant 0 : index
    %c0_55 = arith.constant 0 : index
    %93 = vector.load %arg4[%c0_54, %c0_55] : memref<1x32xf32, #tpu.memory_space<vmem>>, vector<1x32xf32>
    %94 = vector.broadcast %93 : vector<1x32xf32> to vector<16x32xf32>
    %95 = arith.addf %92, %94 : vector<16x32xf32>
    %cst_56 = arith.constant 0.000000e+00 : f32
    %96 = vector.broadcast %cst_56 : f32 to vector<16x32xf32>
    %97 = arith.maximumf %95, %96 : vector<16x32xf32>
    %c0_57 = arith.constant 0 : index
    %c0_58 = arith.constant 0 : index
    %98 = vector.load %arg5[%c0_57, %c0_58] : memref<32x16xf32, #tpu.memory_space<vmem>>, vector<32x16xf32>
    %cst_59 = arith.constant dense<0.000000e+00> : vector<16x16xf32>
    %99 = tpu.matmul %97, %98, %cst_59 {dimension_numbers = #tpu.dot_dimension_numbers<[1], [0], [0], [1], [0, 0, 1, 1], [], []>} : vector<16x32xf32>, vector<32x16xf32>, vector<16x16xf32> -> vector<16x16xf32>
    %100 = arith.truncf %99 : vector<16x16xf32> to vector<16x16xbf16>
    %cst_60 = arith.constant dense<0.000000e+00> : vector<16x16xf32>
    %101 = tpu.matmul %85, %100, %cst_60 {dimension_numbers = #tpu.dot_dimension_numbers<[1], [0], [0], [1], [0, 0, 1, 1], [], []>} : vector<16x16xbf16>, vector<16x16xbf16>, vector<16x16xf32> -> vector<16x16xf32>
    %c0_61 = arith.constant 0 : index
    %c0_62 = arith.constant 0 : index
    %102 = vector.load %arg6[%c0_61, %c0_62] : memref<1x16xf32, #tpu.memory_space<vmem>>, vector<1x16xf32>
    %103 = vector.broadcast %102 : vector<1x16xf32> to vector<16x16xf32>
    %104 = arith.addf %101, %103 : vector<16x16xf32>
    %c0_63 = arith.constant 0 : index
    %c0_64 = arith.constant 0 : index
    %105 = vector.load %arg7[%c0_63, %c0_64] : memref<16x32xf32, #tpu.memory_space<vmem>>, vector<16x32xf32>
    %cst_65 = arith.constant dense<0.000000e+00> : vector<16x32xf32>
    %106 = tpu.matmul %104, %105, %cst_65 {dimension_numbers = #tpu.dot_dimension_numbers<[1], [0], [0], [1], [0, 0, 1, 1], [], []>} : vector<16x16xf32>, vector<16x32xf32>, vector<16x32xf32> -> vector<16x32xf32>
    %c0_66 = arith.constant 0 : index
    %c0_67 = arith.constant 0 : index
    %107 = vector.load %arg8[%c0_66, %c0_67] : memref<1x32xf32, #tpu.memory_space<vmem>>, vector<1x32xf32>
    %108 = vector.broadcast %107 : vector<1x32xf32> to vector<16x32xf32>
    %109 = arith.addf %106, %108 : vector<16x32xf32>
    %cst_68 = arith.constant 0.000000e+00 : f32
    %110 = vector.broadcast %cst_68 : f32 to vector<16x32xf32>
    %111 = arith.maximumf %109, %110 : vector<16x32xf32>
    %112 = arith.truncf %111 : vector<16x32xf32> to vector<16x32xbf16>
    %cst_69 = arith.constant dense<0.000000e+00> : vector<16x32xf32>
    %113 = tpu.matmul %85, %112, %cst_69 {dimension_numbers = #tpu.dot_dimension_numbers<[1], [0], [0], [1], [0, 0, 1, 1], [], []>} : vector<16x16xbf16>, vector<16x32xbf16>, vector<16x32xf32> -> vector<16x32xf32>
    %114 = tpu.concatenate %89, %113 in 1 : vector<16x32xf32>, vector<16x32xf32> -> vector<16x64xf32>
    %c0_70 = arith.constant 0 : index
    %c0_71 = arith.constant 0 : index
    %115 = vector.load %arg9[%c0_70, %c0_71] : memref<64x96xf32, #tpu.memory_space<vmem>>, vector<64x96xf32>
    %cst_72 = arith.constant dense<0.000000e+00> : vector<16x96xf32>
    %116 = tpu.matmul %114, %115, %cst_72 {dimension_numbers = #tpu.dot_dimension_numbers<[1], [0], [0], [1], [0, 0, 1, 1], [], []>} : vector<16x64xf32>, vector<64x96xf32>, vector<16x96xf32> -> vector<16x96xf32>
    %c0_73 = arith.constant 0 : index
    %c0_74 = arith.constant 0 : index
    %117 = vector.load %arg10[%c0_73, %c0_74] : memref<1x96xf32, #tpu.memory_space<vmem>>, vector<1x96xf32>
    %118 = vector.broadcast %117 : vector<1x96xf32> to vector<16x96xf32>
    %119 = arith.addf %116, %118 : vector<16x96xf32>
    %c0_75 = arith.constant 0 : index
    %c0_76 = arith.constant 0 : index
    %120 = vector.load %arg11[%c0_75, %c0_76] : memref<32x64xf32, #tpu.memory_space<vmem>>, vector<32x64xf32>
    %cst_77 = arith.constant dense<0.000000e+00> : vector<16x64xf32>
    %121 = tpu.matmul %90, %120, %cst_77 {dimension_numbers = #tpu.dot_dimension_numbers<[1], [0], [0], [1], [0, 0, 1, 1], [], []>} : vector<16x32xf32>, vector<32x64xf32>, vector<16x64xf32> -> vector<16x64xf32>
    %c0_78 = arith.constant 0 : index
    %c0_79 = arith.constant 0 : index
    %122 = vector.load %arg12[%c0_78, %c0_79] : memref<1x64xf32, #tpu.memory_space<vmem>>, vector<1x64xf32>
    %123 = vector.broadcast %122 : vector<1x64xf32> to vector<16x64xf32>
    %124 = arith.addf %121, %123 : vector<16x64xf32>
    %125 = vector.extract_strided_slice %119 {offsets = [0, 0], sizes = [16, 32], strides = [1, 1]} : vector<16x96xf32> to vector<16x32xf32>
    %126 = vector.extract_strided_slice %124 {offsets = [0, 0], sizes = [16, 32], strides = [1, 1]} : vector<16x64xf32> to vector<16x32xf32>
    %127 = arith.addf %125, %126 : vector<16x32xf32>
    %128 = arith.negf %127 : vector<16x32xf32>
    %129 = math.exp %128 : vector<16x32xf32>
    %cst_80 = arith.constant 1.000000e+00 : f32
    %130 = vector.broadcast %cst_80 : f32 to vector<16x32xf32>
    %131 = arith.addf %130, %129 : vector<16x32xf32>
    %132 = arith.divf %130, %131 : vector<16x32xf32>
    %133 = vector.extract_strided_slice %119 {offsets = [0, 32], sizes = [16, 32], strides = [1, 1]} : vector<16x96xf32> to vector<16x32xf32>
    %134 = vector.extract_strided_slice %124 {offsets = [0, 32], sizes = [16, 32], strides = [1, 1]} : vector<16x64xf32> to vector<16x32xf32>
    %135 = arith.addf %133, %134 : vector<16x32xf32>
    %136 = arith.negf %135 : vector<16x32xf32>
    %137 = math.exp %136 : vector<16x32xf32>
    %cst_81 = arith.constant 1.000000e+00 : f32
    %138 = vector.broadcast %cst_81 : f32 to vector<16x32xf32>
    %139 = arith.addf %138, %137 : vector<16x32xf32>
    %140 = arith.divf %138, %139 : vector<16x32xf32>
    %141 = arith.mulf %140, %80 : vector<16x32xf32>
    %142 = arith.truncf %141 : vector<16x32xf32> to vector<16x32xbf16>
    %cst_82 = arith.constant dense<0.000000e+00> : vector<16x32xf32>
    %143 = tpu.matmul %85, %142, %cst_82 {dimension_numbers = #tpu.dot_dimension_numbers<[1], [0], [0], [1], [0, 0, 1, 1], [], []>} : vector<16x16xbf16>, vector<16x32xbf16>, vector<16x32xf32> -> vector<16x32xf32>
    %c0_83 = arith.constant 0 : index
    %c0_84 = arith.constant 0 : index
    %144 = vector.load %arg13[%c0_83, %c0_84] : memref<32x32xf32, #tpu.memory_space<vmem>>, vector<32x32xf32>
    %cst_85 = arith.constant dense<0.000000e+00> : vector<16x32xf32>
    %145 = tpu.matmul %143, %144, %cst_85 {dimension_numbers = #tpu.dot_dimension_numbers<[1], [0], [0], [1], [0, 0, 1, 1], [], []>} : vector<16x32xf32>, vector<32x32xf32>, vector<16x32xf32> -> vector<16x32xf32>
    %c0_86 = arith.constant 0 : index
    %c0_87 = arith.constant 0 : index
    %146 = vector.load %arg14[%c0_86, %c0_87] : memref<1x32xf32, #tpu.memory_space<vmem>>, vector<1x32xf32>
    %147 = vector.broadcast %146 : vector<1x32xf32> to vector<16x32xf32>
    %148 = arith.addf %145, %147 : vector<16x32xf32>
    %149 = vector.extract_strided_slice %119 {offsets = [0, 64], sizes = [16, 32], strides = [1, 1]} : vector<16x96xf32> to vector<16x32xf32>
    %150 = arith.addf %149, %148 : vector<16x32xf32>
    %151 = math.tanh %150 : vector<16x32xf32>
    %152 = vector.extract_strided_slice %80 {offsets = [0, 0], sizes = [1, 32], strides = [1, 1]} : vector<16x32xf32> to vector<1x32xf32>
    %153 = vector.broadcast %152 : vector<1x32xf32> to vector<16x32xf32>
    %154 = arith.mulf %132, %153 : vector<16x32xf32>
    %cst_88 = arith.constant 1.000000e+00 : f32
    %155 = vector.broadcast %cst_88 : f32 to vector<16x32xf32>
    %156 = arith.subf %155, %132 : vector<16x32xf32>
    %157 = arith.mulf %156, %151 : vector<16x32xf32>
    %158 = arith.addf %154, %157 : vector<16x32xf32>
    %c1_89 = arith.constant 1 : index
    %c0_90 = arith.constant 0 : index
    %c0_91 = arith.constant 0 : index
    %159 = vector.load %arg15[%c1_89, %c0_90, %c0_91] : memref<3x16x16xf32, #tpu.memory_space<vmem>>, vector<1x16x16xf32>
    %160 = vector.shape_cast %159 : vector<1x16x16xf32> to vector<16x16xf32>
    %161 = vector.shape_cast %104 : vector<16x16xf32> to vector<1x16x16xf32>
    tpu.vector_store %arg15[%c1_89, %c0_90, %c0_91], %161 {strides = array<i32>} : memref<3x16x16xf32, #tpu.memory_space<vmem>>, vector<1x16x16xf32>,
    %c2 = arith.constant 2 : index
    %c0_92 = arith.constant 0 : index
    %c0_93 = arith.constant 0 : index
    %162 = vector.load %arg1[%c2, %c0_92, %c0_93] : memref<3x16x16xbf16, #tpu.memory_space<vmem>>, vector<1x16x16xbf16>
    %163 = vector.shape_cast %162 : vector<1x16x16xbf16> to vector<16x16xbf16>
    %164 = arith.truncf %158 : vector<16x32xf32> to vector<16x32xbf16>
    %165 = tpu.concatenate %4, %164 in 1 : vector<16x32xbf16>, vector<16x32xbf16> -> vector<16x64xbf16>
    %cst_94 = arith.constant dense<0.000000e+00> : vector<16x64xf32>
    %166 = tpu.matmul %163, %165, %cst_94 {dimension_numbers = #tpu.dot_dimension_numbers<[1], [0], [0], [1], [0, 0, 1, 1], [], []>} : vector<16x16xbf16>, vector<16x64xbf16>, vector<16x64xf32> -> vector<16x64xf32>
    %167 = vector.extract_strided_slice %166 {offsets = [0, 0], sizes = [16, 32], strides = [1, 1]} : vector<16x64xf32> to vector<16x32xf32>
    %168 = vector.extract_strided_slice %166 {offsets = [0, 32], sizes = [16, 32], strides = [1, 1]} : vector<16x64xf32> to vector<16x32xf32>
    %c0_95 = arith.constant 0 : index
    %c0_96 = arith.constant 0 : index
    %169 = vector.load %arg3[%c0_95, %c0_96] : memref<64x32xf32, #tpu.memory_space<vmem>>, vector<64x32xf32>
    %cst_97 = arith.constant dense<0.000000e+00> : vector<16x32xf32>
    %170 = tpu.matmul %166, %169, %cst_97 {dimension_numbers = #tpu.dot_dimension_numbers<[1], [0], [0], [1], [0, 0, 1, 1], [], []>} : vector<16x64xf32>, vector<64x32xf32>, vector<16x32xf32> -> vector<16x32xf32>
    %c0_98 = arith.constant 0 : index
    %c0_99 = arith.constant 0 : index
    %171 = vector.load %arg4[%c0_98, %c0_99] : memref<1x32xf32, #tpu.memory_space<vmem>>, vector<1x32xf32>
    %172 = vector.broadcast %171 : vector<1x32xf32> to vector<16x32xf32>
    %173 = arith.addf %170, %172 : vector<16x32xf32>
    %cst_100 = arith.constant 0.000000e+00 : f32
    %174 = vector.broadcast %cst_100 : f32 to vector<16x32xf32>
    %175 = arith.maximumf %173, %174 : vector<16x32xf32>
    %c0_101 = arith.constant 0 : index
    %c0_102 = arith.constant 0 : index
    %176 = vector.load %arg5[%c0_101, %c0_102] : memref<32x16xf32, #tpu.memory_space<vmem>>, vector<32x16xf32>
    %cst_103 = arith.constant dense<0.000000e+00> : vector<16x16xf32>
    %177 = tpu.matmul %175, %176, %cst_103 {dimension_numbers = #tpu.dot_dimension_numbers<[1], [0], [0], [1], [0, 0, 1, 1], [], []>} : vector<16x32xf32>, vector<32x16xf32>, vector<16x16xf32> -> vector<16x16xf32>
    %178 = arith.truncf %177 : vector<16x16xf32> to vector<16x16xbf16>
    %cst_104 = arith.constant dense<0.000000e+00> : vector<16x16xf32>
    %179 = tpu.matmul %163, %178, %cst_104 {dimension_numbers = #tpu.dot_dimension_numbers<[1], [0], [0], [1], [0, 0, 1, 1], [], []>} : vector<16x16xbf16>, vector<16x16xbf16>, vector<16x16xf32> -> vector<16x16xf32>
    %c0_105 = arith.constant 0 : index
    %c0_106 = arith.constant 0 : index
    %180 = vector.load %arg6[%c0_105, %c0_106] : memref<1x16xf32, #tpu.memory_space<vmem>>, vector<1x16xf32>
    %181 = vector.broadcast %180 : vector<1x16xf32> to vector<16x16xf32>
    %182 = arith.addf %179, %181 : vector<16x16xf32>
    %c0_107 = arith.constant 0 : index
    %c0_108 = arith.constant 0 : index
    %183 = vector.load %arg7[%c0_107, %c0_108] : memref<16x32xf32, #tpu.memory_space<vmem>>, vector<16x32xf32>
    %cst_109 = arith.constant dense<0.000000e+00> : vector<16x32xf32>
    %184 = tpu.matmul %182, %183, %cst_109 {dimension_numbers = #tpu.dot_dimension_numbers<[1], [0], [0], [1], [0, 0, 1, 1], [], []>} : vector<16x16xf32>, vector<16x32xf32>, vector<16x32xf32> -> vector<16x32xf32>
    %c0_110 = arith.constant 0 : index
    %c0_111 = arith.constant 0 : index
    %185 = vector.load %arg8[%c0_110, %c0_111] : memref<1x32xf32, #tpu.memory_space<vmem>>, vector<1x32xf32>
    %186 = vector.broadcast %185 : vector<1x32xf32> to vector<16x32xf32>
    %187 = arith.addf %184, %186 : vector<16x32xf32>
    %cst_112 = arith.constant 0.000000e+00 : f32
    %188 = vector.broadcast %cst_112 : f32 to vector<16x32xf32>
    %189 = arith.maximumf %187, %188 : vector<16x32xf32>
    %190 = arith.truncf %189 : vector<16x32xf32> to vector<16x32xbf16>
    %cst_113 = arith.constant dense<0.000000e+00> : vector<16x32xf32>
    %191 = tpu.matmul %163, %190, %cst_113 {dimension_numbers = #tpu.dot_dimension_numbers<[1], [0], [0], [1], [0, 0, 1, 1], [], []>} : vector<16x16xbf16>, vector<16x32xbf16>, vector<16x32xf32> -> vector<16x32xf32>
    %192 = tpu.concatenate %167, %191 in 1 : vector<16x32xf32>, vector<16x32xf32> -> vector<16x64xf32>
    %c0_114 = arith.constant 0 : index
    %c0_115 = arith.constant 0 : index
    %193 = vector.load %arg9[%c0_114, %c0_115] : memref<64x96xf32, #tpu.memory_space<vmem>>, vector<64x96xf32>
    %cst_116 = arith.constant dense<0.000000e+00> : vector<16x96xf32>
    %194 = tpu.matmul %192, %193, %cst_116 {dimension_numbers = #tpu.dot_dimension_numbers<[1], [0], [0], [1], [0, 0, 1, 1], [], []>} : vector<16x64xf32>, vector<64x96xf32>, vector<16x96xf32> -> vector<16x96xf32>
    %c0_117 = arith.constant 0 : index
    %c0_118 = arith.constant 0 : index
    %195 = vector.load %arg10[%c0_117, %c0_118] : memref<1x96xf32, #tpu.memory_space<vmem>>, vector<1x96xf32>
    %196 = vector.broadcast %195 : vector<1x96xf32> to vector<16x96xf32>
    %197 = arith.addf %194, %196 : vector<16x96xf32>
    %c0_119 = arith.constant 0 : index
    %c0_120 = arith.constant 0 : index
    %198 = vector.load %arg11[%c0_119, %c0_120] : memref<32x64xf32, #tpu.memory_space<vmem>>, vector<32x64xf32>
    %cst_121 = arith.constant dense<0.000000e+00> : vector<16x64xf32>
    %199 = tpu.matmul %168, %198, %cst_121 {dimension_numbers = #tpu.dot_dimension_numbers<[1], [0], [0], [1], [0, 0, 1, 1], [], []>} : vector<16x32xf32>, vector<32x64xf32>, vector<16x64xf32> -> vector<16x64xf32>
    %c0_122 = arith.constant 0 : index
    %c0_123 = arith.constant 0 : index
    %200 = vector.load %arg12[%c0_122, %c0_123] : memref<1x64xf32, #tpu.memory_space<vmem>>, vector<1x64xf32>
    %201 = vector.broadcast %200 : vector<1x64xf32> to vector<16x64xf32>
    %202 = arith.addf %199, %201 : vector<16x64xf32>
    %203 = vector.extract_strided_slice %197 {offsets = [0, 0], sizes = [16, 32], strides = [1, 1]} : vector<16x96xf32> to vector<16x32xf32>
    %204 = vector.extract_strided_slice %202 {offsets = [0, 0], sizes = [16, 32], strides = [1, 1]} : vector<16x64xf32> to vector<16x32xf32>
    %205 = arith.addf %203, %204 : vector<16x32xf32>
    %206 = arith.negf %205 : vector<16x32xf32>
    %207 = math.exp %206 : vector<16x32xf32>
    %cst_124 = arith.constant 1.000000e+00 : f32
    %208 = vector.broadcast %cst_124 : f32 to vector<16x32xf32>
    %209 = arith.addf %208, %207 : vector<16x32xf32>
    %210 = arith.divf %208, %209 : vector<16x32xf32>
    %211 = vector.extract_strided_slice %197 {offsets = [0, 32], sizes = [16, 32], strides = [1, 1]} : vector<16x96xf32> to vector<16x32xf32>
    %212 = vector.extract_strided_slice %202 {offsets = [0, 32], sizes = [16, 32], strides = [1, 1]} : vector<16x64xf32> to vector<16x32xf32>
    %213 = arith.addf %211, %212 : vector<16x32xf32>
    %214 = arith.negf %213 : vector<16x32xf32>
    %215 = math.exp %214 : vector<16x32xf32>
    %cst_125 = arith.constant 1.000000e+00 : f32
    %216 = vector.broadcast %cst_125 : f32 to vector<16x32xf32>
    %217 = arith.addf %216, %215 : vector<16x32xf32>
    %218 = arith.divf %216, %217 : vector<16x32xf32>
    %219 = arith.mulf %218, %158 : vector<16x32xf32>
    %220 = arith.truncf %219 : vector<16x32xf32> to vector<16x32xbf16>
    %cst_126 = arith.constant dense<0.000000e+00> : vector<16x32xf32>
    %221 = tpu.matmul %163, %220, %cst_126 {dimension_numbers = #tpu.dot_dimension_numbers<[1], [0], [0], [1], [0, 0, 1, 1], [], []>} : vector<16x16xbf16>, vector<16x32xbf16>, vector<16x32xf32> -> vector<16x32xf32>
    %c0_127 = arith.constant 0 : index
    %c0_128 = arith.constant 0 : index
    %222 = vector.load %arg13[%c0_127, %c0_128] : memref<32x32xf32, #tpu.memory_space<vmem>>, vector<32x32xf32>
    %cst_129 = arith.constant dense<0.000000e+00> : vector<16x32xf32>
    %223 = tpu.matmul %221, %222, %cst_129 {dimension_numbers = #tpu.dot_dimension_numbers<[1], [0], [0], [1], [0, 0, 1, 1], [], []>} : vector<16x32xf32>, vector<32x32xf32>, vector<16x32xf32> -> vector<16x32xf32>
    %c0_130 = arith.constant 0 : index
    %c0_131 = arith.constant 0 : index
    %224 = vector.load %arg14[%c0_130, %c0_131] : memref<1x32xf32, #tpu.memory_space<vmem>>, vector<1x32xf32>
    %225 = vector.broadcast %224 : vector<1x32xf32> to vector<16x32xf32>
    %226 = arith.addf %223, %225 : vector<16x32xf32>
    %227 = vector.extract_strided_slice %197 {offsets = [0, 64], sizes = [16, 32], strides = [1, 1]} : vector<16x96xf32> to vector<16x32xf32>
    %228 = arith.addf %227, %226 : vector<16x32xf32>
    %229 = math.tanh %228 : vector<16x32xf32>
    %230 = vector.extract_strided_slice %158 {offsets = [0, 0], sizes = [1, 32], strides = [1, 1]} : vector<16x32xf32> to vector<1x32xf32>
    %231 = vector.broadcast %230 : vector<1x32xf32> to vector<16x32xf32>
    %232 = arith.mulf %210, %231 : vector<16x32xf32>
    %cst_132 = arith.constant 1.000000e+00 : f32
    %233 = vector.broadcast %cst_132 : f32 to vector<16x32xf32>
    %234 = arith.subf %233, %210 : vector<16x32xf32>
    %235 = arith.mulf %234, %229 : vector<16x32xf32>
    %236 = arith.addf %232, %235 : vector<16x32xf32>
    %c2_133 = arith.constant 2 : index
    %c0_134 = arith.constant 0 : index
    %c0_135 = arith.constant 0 : index
    %237 = vector.load %arg15[%c2_133, %c0_134, %c0_135] : memref<3x16x16xf32, #tpu.memory_space<vmem>>, vector<1x16x16xf32>
    %238 = vector.shape_cast %237 : vector<1x16x16xf32> to vector<16x16xf32>
    %239 = vector.shape_cast %182 : vector<16x16xf32> to vector<1x16x16xf32>
    tpu.vector_store %arg15[%c2_133, %c0_134, %c0_135], %239 {strides = array<i32>} : memref<3x16x16xf32, #tpu.memory_space<vmem>>, vector<1x16x16xf32>,
    %c0_136 = arith.constant 0 : index
    %c0_137 = arith.constant 0 : index
    %240 = vector.load %arg17[%c0_136, %c0_137] : memref<16x32xf32, #tpu.memory_space<vmem>>, vector<16x32xf32>
    tpu.vector_store %arg17[%c0_136, %c0_137], %236 {strides = array<i32>} : memref<16x32xf32, #tpu.memory_space<vmem>>, vector<16x32xf32>,
    %c0_i32_138 = arith.constant 0 : i32
    %241 = arith.cmpi eq, %arg0, %c0_i32_138 : i32
    %242 = arith.extui %241 : i1 to i32
    %c0_i32_139 = arith.constant 0 : i32
    %243 = arith.cmpi ne, %242, %c0_i32_139 : i32
    scf.if %243 {
      %c0_140 = arith.constant 0 : index
      %c0_141 = arith.constant 0 : index
      %244 = vector.load %arg16[%c0_140, %c0_141] : memref<16x32xf32, #tpu.memory_space<vmem>>, vector<16x32xf32>
      tpu.vector_store %arg16[%c0_140, %c0_141], %236 {strides = array<i32>} : memref<16x32xf32, #tpu.memory_space<vmem>>, vector<16x32xf32>,
    } else {
    }
    return
  }
  func.func @transform_0(%arg0: i32) -> (i32, i32, i32) {
    %c0_i32 = arith.constant 0 : i32
    %c0_i32_0 = arith.constant 0 : i32
    %c0_i32_1 = arith.constant 0 : i32
    return %arg0, %c0_i32, %c0_i32_0 : i32, i32, i32
  }
  func.func @transform_1(%arg0: i32) -> (i32, i32) {
    %c0_i32 = arith.constant 0 : i32
    %c0_i32_0 = arith.constant 0 : i32
    %c0_i32_1 = arith.constant 0 : i32
    return %c0_i32, %c0_i32_0 : i32, i32
  }
  func.func @transform_2(%arg0: i32) -> (i32, i32) {
    %c0_i32 = arith.constant 0 : i32
    %c0_i32_0 = arith.constant 0 : i32
    %c0_i32_1 = arith.constant 0 : i32
    return %c0_i32, %c0_i32_0 : i32, i32
  }
  func.func @transform_3(%arg0: i32) -> (i32, i32) {
    %c0_i32 = arith.constant 0 : i32
    %c0_i32_0 = arith.constant 0 : i32
    %c0_i32_1 = arith.constant 0 : i32
    return %c0_i32, %c0_i32_0 : i32, i32
  }
  func.func @transform_4(%arg0: i32) -> (i32, i32) {
    %c0_i32 = arith.constant 0 : i32
    %c0_i32_0 = arith.constant 0 : i32
    %c0_i32_1 = arith.constant 0 : i32
    return %c0_i32, %c0_i32_0 : i32, i32
  }
  func.func @transform_5(%arg0: i32) -> (i32, i32) {
    %c0_i32 = arith.constant 0 : i32
    %c0_i32_0 = arith.constant 0 : i32
    %c0_i32_1 = arith.constant 0 : i32
    return %c0_i32, %c0_i32_0 : i32, i32
  }
  func.func @transform_6(%arg0: i32) -> (i32, i32) {
    %c0_i32 = arith.constant 0 : i32
    %c0_i32_0 = arith.constant 0 : i32
    %c0_i32_1 = arith.constant 0 : i32
    return %c0_i32, %c0_i32_0 : i32, i32
  }
  func.func @transform_7(%arg0: i32) -> (i32, i32) {
    %c0_i32 = arith.constant 0 : i32
    %c0_i32_0 = arith.constant 0 : i32
    %c0_i32_1 = arith.constant 0 : i32
    return %c0_i32, %c0_i32_0 : i32, i32
  }
  func.func @transform_8(%arg0: i32) -> (i32, i32) {
    %c0_i32 = arith.constant 0 : i32
    %c0_i32_0 = arith.constant 0 : i32
    %c0_i32_1 = arith.constant 0 : i32
    return %c0_i32, %c0_i32_0 : i32, i32
  }
  func.func @transform_9(%arg0: i32) -> (i32, i32) {
    %c0_i32 = arith.constant 0 : i32
    %c0_i32_0 = arith.constant 0 : i32
    %c0_i32_1 = arith.constant 0 : i32
    return %c0_i32, %c0_i32_0 : i32, i32
  }
  func.func @transform_10(%arg0: i32) -> (i32, i32) {
    %c0_i32 = arith.constant 0 : i32
    %c0_i32_0 = arith.constant 0 : i32
    %c0_i32_1 = arith.constant 0 : i32
    return %c0_i32, %c0_i32_0 : i32, i32
  }
  func.func @transform_11(%arg0: i32) -> (i32, i32) {
    %c0_i32 = arith.constant 0 : i32
    %c0_i32_0 = arith.constant 0 : i32
    %c0_i32_1 = arith.constant 0 : i32
    return %c0_i32, %c0_i32_0 : i32, i32
  }
  func.func @transform_12(%arg0: i32) -> (i32, i32) {
    %c0_i32 = arith.constant 0 : i32
    %c0_i32_0 = arith.constant 0 : i32
    %c0_i32_1 = arith.constant 0 : i32
    return %c0_i32, %c0_i32_0 : i32, i32
  }
  func.func @transform_13(%arg0: i32) -> (i32, i32) {
    %c0_i32 = arith.constant 0 : i32
    %c0_i32_0 = arith.constant 0 : i32
    %c0_i32_1 = arith.constant 0 : i32
    return %c0_i32, %c0_i32_0 : i32, i32
  }
  func.func @transform_14(%arg0: i32) -> (i32, i32, i32) {
    %c0_i32 = arith.constant 0 : i32
    %c0_i32_0 = arith.constant 0 : i32
    %c0_i32_1 = arith.constant 0 : i32
    return %arg0, %c0_i32, %c0_i32_0 : i32, i32, i32
  }
  func.func @transform_15(%arg0: i32) -> (i32, i32) {
    %c0_i32 = arith.constant 0 : i32
    %c0_i32_0 = arith.constant 0 : i32
    %c0_i32_1 = arith.constant 0 : i32
    return %c0_i32, %c0_i32_0 : i32, i32
  }
}

</mosaic_0001>

<bundles_post_ra>
// kernel: _gae_rnn_forward_impl.1
= control target key start
LH: loop header
LB: loop body
LE: loop exit
PB: predicated region body
PF: predicated region fallthrough
CT: control target
= control target key end

     0   :  { %21 = vsyncpa [#allocation4], 0  ;;  %vm56_vm0 = vcmask 261120   ;;  %v3382_v0 = vmov 0.0   ;;  %vm3383_vm1 = vmmov 0   ;;  %s4025_s0 = inlined_call_operand.vmem [shape: bf16[3,16,16], index: 0, kind: input, shape index: {}]   ;;  %s4026_s1 = inlined_call_operand.vmem [shape: f32[16,32], index: 1, kind: input, shape index: {}]   ;;  %s4027_s2 = inlined_call_operand.vmem [shape: f32[64,32], index: 2, kind: input, shape index: {}]   ;;  %s4028_s3 = inlined_call_operand.vmem [shape: f32[1,32], index: 3, kind: input, shape index: {}]   ;;  %s4029_s4 = inlined_call_operand.vmem [shape: f32[32,16], index: 4, kind: input, shape index: {}]   ;;  %s4030_s5 = inlined_call_operand.vmem [shape: f32[1,16], index: 5, kind: input, shape index: {}]   ;;  %s4031_s6 = inlined_call_operand.vmem [shape: f32[16,32], index: 6, kind: input, shape index: {}]   ;;  %s4032_s7 = inlined_call_operand.vmem [shape: f32[1,32], index: 7, kind: input, shape index: {}]   ;;  %s4033_s8 = inlined_call_operand.vmem [shape: f32[64,96], index: 8, kind: input, shape index: {}]   ;;  %s4034_s9 = inlined_call_operand.vmem [shape: f32[1,96], index: 9, kind: input, shape index: {}]   ;;  %s4035_s10 = inlined_call_operand.vmem [shape: f32[32,64], index: 10, kind: input, shape index: {}]   ;;  %s4036_s11 = inlined_call_operand.vmem [shape: f32[1,64], index: 11, kind: input, shape index: {}]   ;;  %s4037_s12 = inlined_call_operand.vmem [shape: f32[32,32], index: 12, kind: input, shape index: {}]   ;;  %s4038_s13 = inlined_call_operand.vmem [shape: f32[1,32], index: 13, kind: input, shape index: {}]   ;;  %s4039_s14 = inlined_call_operand.hbm [shape: f32[3,16,16], index: 14, kind: output, shape index: {0}]   ;;  %s4040_s15 = inlined_call_operand.hbm [shape: f32[16,32], index: 15, kind: output, shape index: {1}]  }
   0x1   :  { %57 = vst.msk [vmem:[#allocation2] sm:$0xff] %vm56_vm0, %v3382_v0  ;;  %58 = vst.msk [vmem:[#allocation2 + $0x8] sm:$0xff] %vm56_vm0, %v3382_v0  ;;  %2800 = vmatprep.subr.bf16.mxu1 %v3382_v0  ;;  %2802 = vmatprep.mubr.msk.bf16.mxu1 %vm3383_vm1, %v3382_v0 }
   0x2   :  { %22 = vsyncpa [#allocation6], 0  ;;  %s3384_s18 = smov 32   ;;  %v59_v4 = vld [vmem:[%s4026_s1] sm:$0xff]  ;;  %v60_v5 = vld [vmem:[%s4026_s1 + $0x8] sm:$0xff]  ;;  %vm80_vm2 = vcmask 130048  }
   0x3   :  { %v125_v6 = vld [vmem:[%s4027_s2] sm:$0xff]  ;;  %v126_v7 = vld [vmem:[%s4027_s2 + $0x8] sm:$0xff]  ;;  %v3497_v8 = vpack.c.bf16 %v60_v5, %v59_v4  ;;  %v127_v11 = vld [vmem:[%s4027_s2 + $0x10] sm:$0xff]  ;;  %vm140_vm3 = vcmask 523264   ;;  %s3385_s26 = smov 96  }
   0x4   :  { %v3499_v9 = vpack.c.bf16 %v126_v7, %v125_v6  ;;  %v128_v12 = vld [vmem:[%s4027_s2 + $0x18] sm:$0xff]  ;;  %v3512_v14 = vld [vmem:[%s4025_s0] sm:$0xff]   ;;  %v130_v17 = vld [vmem:[%s4027_s2 + $0x28] sm:$0xff] }
   0x5   :  { %v3515_v15 = vpack.c.bf16 %v128_v12, %v127_v11  ;;  %v129_v16 = vld [vmem:[%s4027_s2 + $0x20] sm:$0xff]  ;;  %v131_v19 = vld [vmem:[%s4027_s2 + $0x30] sm:$0xff]  ;;  %v132_v20 = vld [vmem:[%s4027_s2 + $0x38] sm:$0xff] }
   0x6   :  { %v3527_v18 = vpack.c.bf16 %v130_v17, %v129_v16  ;;  %v3537_v21 = vpack.c.bf16 %v132_v20, %v131_v19  ;;  %v224_v22 = vld [vmem:[%s4029_s4] sm:$0xff]  ;;  %v225_v23 = vld [vmem:[%s4029_s4 + $0x8] sm:$0xff]  ;;  %v226_v29 = vld [vmem:[%s4029_s4 + $0x10] sm:$0xff] }
   0x7   :  { %v3548_v24 = vpack.c.bf16 %v225_v23, %v224_v22  ;;  %v227_v30 = vld [vmem:[%s4029_s4 + $0x18] sm:$0xff]  ;;  %v3574_v32 = vld [vmem:[%s4028_s3] ss:$0 sm:$0xff]  ;;  %v359_v43 = vld [vmem:[%s4031_s6 + $0x8] sm:$0xff]  ;;  %s3386_s3 = smov 64  }
   0x8   :  { %v3478_v1 = vld [vmem:[#allocation2] sm:$0xff]  ;;  %v3480_v2 = vld [vmem:[#allocation2 + $0x8] sm:$0xff]  ;;  %v3566_v31 = vpack.c.bf16 %v227_v30, %v226_v29  ;;  %v504_v62 = vld [vmem:[%s4033_s8 + $0x10] sm:$0xff] }
   0x9   :  { %v66_v3 = vpack.c.bf16 %v3480_v2, %v3478_v1  ;;  %3123 = vmatprep.subr.bf16.mxu0 %v3548_v24  ;;  %v358_v42 = vld [vmem:[%s4031_s6] sm:$0xff]  ;;  %v503_v61 = vld [vmem:[%s4033_s8 + $0x8] sm:$0xff]  ;;  %v509_v16 = vld [vmem:[%s4033_s8 + $0x38] sm:$0xff] }
   0xa   :  { %3125 = vmatpush3.bf16.msra.mxu0 %v3548_v24  ;;  %v3593_v44 = vpack.c.bf16 %v359_v43, %v358_v42  ;;  %v3600_v45 = vld [vmem:[%s4030_s5] ss:$0 sm:$0xff]  ;;  %v507_v6 = vld [vmem:[%s4033_s8 + $0x28] sm:$0xff]  ;;  %v600_v19 = vld [vmem:[%s4035_s10 + $0x10] sm:$0xff] }
   0xb   :  { %68 = vrot.lane.b32.xlu0 %v66_v3, %s3384_s18  ;;  %3127 = vmatprep.subr.bf16.mxu0 %v3566_v31  ;;  %v3611_v52 = vld [vmem:[%s4032_s7] ss:$0 sm:$0xff]  ;;  %v505_v3 = vld [vmem:[%s4033_s8 + $0x18] sm:$0xff] }
   0xc   :  { %v502_v60 = vld [vmem:[%s4033_s8] sm:$0xff]  ;;  %v3631_v4 = vpack.c.bf16 %v505_v3, %v504_v62  ;;  %v601_v20 = vld [vmem:[%s4035_s10 + $0x18] sm:$0xff] }
   0xd   :  { %v3626_v63 = vpack.c.bf16 %v503_v61, %v502_v60  ;;  %v506_v5 = vld [vmem:[%s4033_s8 + $0x20] sm:$0xff]  ;;  %v3674_v22 = vpack.c.bf16 %v601_v20, %v600_v19 }
   0xe   :  { %3129 = vmatpush3.bf16.msra.mxu0 %v3566_v31  ;;  %v598_v7 = vld [vmem:[%s4035_s10] sm:$0xff]  ;;  %v3650_v12 = vpack.c.bf16 %v507_v6, %v506_v5  ;;  %v763_v5 = vld [vmem:[%s4037_s12 + $0x8] sm:$0xff] }
   0xf   :  { %2836 = vmatprep.subr.bf16.mxu0 %v3382_v0  ;;  %v762_v3 = vld [vmem:[%s4037_s12] sm:$0xff] }
  0x10   :  { %v3722_v6 = vpack.c.bf16 %v763_v5, %v762_v3 }
  0x7d   :  { %v69_v10 = vpop.permute.xlu0 %68 }
  0x7e   :  { %v73_v13 = vsel %vm56_vm0, %v3497_v8, %v69_v10  ;;  %v599_v10 = vld [vmem:[%s4035_s10 + $0x8] sm:$0xff] }
  0x7f   :  { %2801 = vmatpush3.bf16.msra.mxu1 %v73_v13  ;;  %v3647_v11 = vpack.c.bf16 %v599_v10, %v598_v7  ;;  %v508_v13 = vld [vmem:[%s4033_s8 + $0x30] sm:$0xff]  ;;  %v765_v10 = vld [vmem:[%s4037_s12 + $0x18] sm:$0xff] }
  0x80   :  { %3107 = vmatprep.subr.bf16.mxu1 %v3499_v9  ;;  %v3662_v17 = vpack.c.bf16 %v509_v16, %v508_v13  ;;  %v764_v7 = vld [vmem:[%s4037_s12 + $0x10] sm:$0xff] }
  0x81   :  { %v3731_v16 = vpack.c.bf16 %v765_v10, %v764_v7 }
  0x82   :  { %2803 = vmatmul.mubr.msk.bf16.vlgmr.msra.gmra.mrb[0].mxu1 %vm80_vm2, %v3512_v14 }
  0x83   :  { %3109 = vmatpush3.bf16.msra.mxu1 %v3499_v9 }
  0x84   :  { %3111 = vmatprep.subr.bf16.mxu1 %v3515_v15 }
  0x87   :  { %3113 = vmatpush3.bf16.msra.mxu1 %v3515_v15 }
  0x88   :  { %3115 = vmatprep.subr.bf16.mxu1 %v3527_v18 }
  0x8b   :  { %3117 = vmatpush3.bf16.msra.mxu1 %v3527_v18 }
  0x8c   :  { %3119 = vmatprep.subr.bf16.mxu1 %v3537_v21 }
  0x8f   :  { %3121 = vmatpush3.bf16.msra.mxu1 %v3537_v21 }
  0x90   :  { %3131 = vmatprep.subr.bf16.mxu1 %v3593_v44 }
 0x155   :  { %v3552_v25 = vpop.f32.mrb[0].mxu1 }
 0x156   :  { %v2804_v26 = vpop.f32.mrb[1].mxu1  ;;  %2822 = vmatprep.mubr.msk.f32.mxu1 %vm140_vm3, %v3552_v25 }
 0x157   :  { %v3556_v27 = vpop.f32.mrb[2].mxu1 }
 0x158   :  { %v2805_v28 = vpop.f32.mrb[3].mxu1  ;;  %2823 = vmatmul.mubr.msk.f32.vlgmr.msra.gmra.mrb[4].mxu1 %vm140_vm3, %v3556_v27 }
 0x159   :  { %3133 = vmatpush3.bf16.msra.mxu1 %v3593_v44 }
 0x15a   :  { %3135 = vmatprep.subr.bf16.mxu1 %v3626_v63 }
 0x22b   :  { %v2824_v33 = vpop.f32.mrb[4].mxu1 }
 0x22c   :  { %v219_v34 = vadd.f32 %v2824_v33, %v3574_v32  ;;  %v213_v35 = vpop.f32.mrb[5].mxu1 }
 0x22d   :  { %v214_v36 = vadd.f32 %v3574_v32, %v213_v35 }
 0x22e   :  { %v223_v38 = vmax.f32 %v219_v34, 0.0 }
 0x22f   :  { %v222_v37 = vmax.f32 %v214_v36, 0.0 }
 0x231   :  { %2833 = vmatprep.mubr.msk.f32.mxu0 %vm56_vm0, %v222_v37 }
 0x232   :  { %2834 = vmatmul.mubr.msk.f32.vlgmr.msra.gmra.mrb[0].mxu0 %vm56_vm0, %v223_v38  ;;  %v3709_v38 = vld [vmem:[%s4036_s11] ss:$0 sm:$0xff] }
 0x233   :  { %2838 = vmatprep.mubr.msk.bf16.mxu0 %vm3383_vm1, %v3382_v0 }
 0x305   :  { %v2835_v39 = vpop.f32.mrb[0].mxu0 }
 0x306   :  { %v300_v40 = vpop.f32.mrb[1].mxu0 }
 0x307   :  { %v309_v41 = vpack.c.bf16 %v2835_v39, %v300_v40 }
 0x309   :  { %2837 = vmatpush3.bf16.msra.mxu0 %v309_v41 }
 0x30a   :  { %2849 = vmatprep.subr.bf16.mxu0 %v3382_v0 }
 0x30c   :  { %2839 = vmatmul.mubr.msk.bf16.vlgmr.msra.gmra.mrb[4].mxu0 %vm80_vm2, %v3512_v14 }
 0x30d   :  { %2851 = vmatprep.mubr.msk.bf16.mxu0 %vm3383_vm1, %v3382_v0 }
 0x3df   :  { %v351_v46 = vpop.f32.mrb[4].mxu0 }
 0x3e0   :  { %v352_v47 = vadd.f32 %v3600_v45, %v351_v46  ;;  %v2840_v48 = vpop.f32.mrb[5].mxu0 }
 0x3e1   :  { %v354_v49 = vpop.f32.mrb[6].mxu0 }
 0x3e2   :  { %886 = vst.msk [vmem:[#allocation3] sm:$0xff] %vm80_vm2, %v352_v47  ;;  %v355_v50 = vadd.f32 %v3600_v45, %v354_v49  ;;  %v2841_v51 = vpop.f32.mrb[7].mxu0  ;;  %2846 = vmatprep.mubr.msk.f32.mxu1 %vm80_vm2, %v352_v47 }
 0x3e4   :  { %887 = vst.msk [vmem:[#allocation3 + $0x8] sm:$0xff] %vm80_vm2, %v355_v50  ;;  %2847 = vmatmul.mubr.msk.f32.vlgmr.msra.gmra.mrb[6].mxu1 %vm80_vm2, %v355_v50 }
 0x3e5   :  { %3137 = vmatpush3.bf16.msra.mxu1 %v3626_v63 }
 0x3e6   :  { %3139 = vmatprep.subr.bf16.mxu1 %v3631_v4 }
 0x3e9   :  { %3141 = vmatpush3.bf16.msra.mxu1 %v3631_v4 }
 0x3ea   :  { %3143 = vmatprep.subr.bf16.mxu1 %v3650_v12 }
 0x3ed   :  { %3145 = vmatpush3.bf16.msra.mxu1 %v3650_v12 }
 0x3ee   :  { %3147 = vmatprep.subr.bf16.mxu1 %v3662_v17 }
 0x3f1   :  { %3149 = vmatpush3.bf16.msra.mxu1 %v3662_v17 }
 0x3f2   :  { %2902 = vmatprep.subr.bf16.mxu1 %v3382_v0 }
 0x4b7   :  { %v2848_v53 = vpop.f32.mrb[6].mxu1 }
 0x4b8   :  { %v445_v54 = vadd.f32 %v2848_v53, %v3611_v52  ;;  %v439_v55 = vpop.f32.mrb[7].mxu1 }
 0x4b9   :  { %v440_v56 = vadd.f32 %v3611_v52, %v439_v55 }
 0x4ba   :  { %v449_v57 = vmax.f32 %v445_v54, 0.0 }
 0x4bb   :  { %v448_v58 = vmax.f32 %v440_v56, 0.0 }
 0x4bd   :  { %v450_v59 = vpack.c.bf16 %v449_v57, %v448_v58 }
 0x4bf   :  { %2850 = vmatpush3.bf16.msra.mxu0 %v450_v59 }
 0x4c0   :  { %3151 = vmatprep.subr.bf16.mxu0 %v3647_v11 }
 0x4c2   :  { %2852 = vmatmul.mubr.msk.bf16.vlgmr.msra.gmra.mrb[8].mxu0 %vm80_vm2, %v3512_v14 }
 0x4c3   :  { %3153 = vmatpush3.bf16.msra.mxu0 %v3647_v11 }
 0x4c4   :  { %3155 = vmatprep.subr.bf16.mxu0 %v3674_v22 }
 0x4c7   :  { %3157 = vmatpush3.bf16.msra.mxu0 %v3674_v22 }
 0x4c8   :  { %2885 = vmatprep.subr.bf16.mxu0 %v3382_v0 }
 0x595   :  { %v485_v23 = vpop.f32.mrb[8].mxu0 }
 0x596   :  { %494 = vrot.lane.b32.xlu0 %v485_v23, %s3384_s18  ;;  %v2853_v26 = vpop.f32.mrb[9].mxu0 }
 0x597   :  { %v488_v28 = vpop.f32.mrb[10].mxu0 }
 0x598   :  { %496 = vrot.lane.b32.xlu1 %v488_v28, %s3384_s18  ;;  %v2854_v29 = vpop.f32.mrb[11].mxu0 }
 0x59a   :  { %611 = vrot.lane.b32.xlu0 %v3556_v27, %s3385_s26 }
 0x59c   :  { %609 = vrot.lane.b32.xlu1 %v3552_v25, %s3385_s26 }
 0x59e   :  { %710 = vrot.lane.b32.xlu0 %v3480_v2, %s3384_s18 }
 0x5a0   :  { %708 = vrot.lane.b32.xlu1 %v3478_v1, %s3384_s18 }
 0x608   :  { %v495_v30 = vpop.permute.xlu0 %494 }
 0x609   :  { %v500_v33 = vsel %vm56_vm0, %v3552_v25, %v495_v30 }
 0x60a   :  { %2871 = vmatprep.mubr.msk.f32.mxu1 %vm140_vm3, %v500_v33  ;;  %v497_v34 = vpop.permute.xlu1 %496 }
 0x60b   :  { %v501_v35 = vsel %vm56_vm0, %v3556_v27, %v497_v34  ;;  %v3704_v27 = vld [vmem:[%s4034_s9] ss:$0 sm:$0xff] }
 0x60c   :  { %2872 = vmatmul.mubr.msk.f32.vlgmr.msra.gmra.mrb[8].mxu1 %vm140_vm3, %v501_v35  ;;  %v612_v2 = vpop.permute.xlu0 %611 }
 0x60d   :  { %2904 = vmatprep.mubr.msk.bf16.mxu1 %vm3383_vm1, %v3382_v0 }
 0x60e   :  { %v610_v36 = vpop.permute.xlu1 %609 }
 0x60f   :  { %2882 = vmatprep.mubr.msk.f32.mxu0 %vm56_vm0, %v610_v36 }
 0x610   :  { %2883 = vmatmul.mubr.msk.f32.vlgmr.msra.gmra.mrb[2].mxu0 %vm56_vm0, %v612_v2  ;;  %v711_v56 = vpop.permute.xlu0 %710 }
 0x611   :  { %2887 = vmatprep.mubr.msk.bf16.mxu0 %vm3383_vm1, %v3382_v0 }
 0x612   :  { %v709_v57 = vpop.permute.xlu1 %708 }
 0x6df   :  { %v2873_v25 = vpop.f32.mrb[8].mxu1 }
 0x6e0   :  { %v589_v37 = vpop.f32.mrb[9].mxu1  ;;  %v595_v40 = vadd.f32 %v2873_v25, %v3704_v27 }
 0x6e1   :  { %v590_v43 = vadd.f32 %v3704_v27, %v589_v37 }
 0x6e3   :  { %v2884_v39 = vpop.f32.mrb[2].mxu0 }
 0x6e4   :  { %v689_v41 = vadd.f32 %v2884_v39, %v3709_v38  ;;  %v683_v42 = vpop.f32.mrb[3].mxu0  ;;  %v866_v39 = vlaneseq }
 0x6e5   :  { %v684_v46 = vadd.f32 %v3709_v38, %v683_v42 }
 0x6e6   :  { %v693_v47 = vadd.f32 %v689_v41, %v595_v40  ;;  %v867_v41 = vshrl.u32 %v866_v39, 7 }
 0x6e7   :  { %v692_v48 = vadd.f32 %v684_v46, %v590_v43 }
 0x6e8   :  { %v2591_v49 = vmul.f32 -1.442695, %v693_v47  ;;  %v3756_v42 = vsub.s32 0, %v867_v41 }
 0x6e9   :  { %v2590_v50 = vmul.f32 -1.442695, %v692_v48 }
 0x6ea   :  { %3298 = vpow2.f32 %v2591_v49  ;;  %v869_v46 = vrot.slane %v3478_v1, %v3756_v42 }
 0x6eb   :  { %3300 = vpow2.f32 %v2590_v50 }
 0x6f4   :  { %v3299_v51 = vpop.eup %3298 }
 0x6f5   :  { %v3301_v53 = vpop.eup %3300  ;;  %v701_v54 = vadd.f32 1.0, %v3299_v51 }
 0x6f6   :  { %v700_v55 = vadd.f32 1.0, %v3301_v53 }
 0x6f7   :  { %3302 = vrcp.f32 %v701_v54 }
 0x6f8   :  { %3304 = vrcp.f32 %v700_v55 }
 0x701   :  { %v3303_v58 = vpop.eup %3302 }
 0x702   :  { %v3305_v59 = vpop.eup %3304  ;;  %v715_v60 = vmul.f32 %v3303_v58, %v711_v56  ;;  %v873_v47 = vsub.f32 1.0, %v3303_v58  ;;  %v871_v49 = vmul.f32 %v3303_v58, %v869_v46  ;;  %v3772_v58 = vld [vmem:[%s4025_s0 + $0x8] sm:$0xff]  }
 0x703   :  { %v714_v61 = vmul.f32 %v3305_v59, %v709_v57  ;;  %v870_v51 = vmul.f32 %v3305_v59, %v869_v46 }
 0x705   :  { %v716_v62 = vpack.c.bf16 %v715_v60, %v714_v61 }
 0x707   :  { %718 = vrot.lane.b32.xlu1 %v716_v62, %s3385_s26 }
 0x779   :  { %v719_v13 = vpop.permute.xlu1 %718 }
 0x77a   :  { %2886 = vmatpush3.bf16.msra.mxu0 %v719_v13 }
 0x77b   :  { %3159 = vmatprep.subr.bf16.mxu0 %v3722_v6 }
 0x77d   :  { %2888 = vmatmul.mubr.msk.bf16.vlgmr.msra.gmra.mrb[12].mxu0 %vm80_vm2, %v3512_v14  ;;  %v3748_v14 = vld [vmem:[%s4038_s13] ss:$0 sm:$0xff] }
 0x77e   :  { %3161 = vmatpush3.bf16.msra.mxu0 %v3722_v6 }
 0x77f   :  { %3163 = vmatprep.subr.bf16.mxu0 %v3731_v16 }
 0x782   :  { %3165 = vmatpush3.bf16.msra.mxu0 %v3731_v16 }
 0x783   :  { %3183 = vmatprep.subr.bf16.mxu0 %v3548_v24 }
 0x850   :  { %v755_v19 = vpop.f32.mrb[12].mxu0 }
 0x851   :  { %v2889_v20 = vpop.f32.mrb[13].mxu0  ;;  %2899 = vmatprep.mubr.msk.f32.mxu0 %vm56_vm0, %v755_v19 }
 0x852   :  { %v758_v23 = vpop.f32.mrb[14].mxu0 }
 0x853   :  { %v2890_v26 = vpop.f32.mrb[15].mxu0  ;;  %2900 = vmatmul.mubr.msk.f32.vlgmr.msra.gmra.mrb[16].mxu0 %vm56_vm0, %v758_v23 }
 0x854   :  { %3185 = vmatpush3.bf16.msra.mxu0 %v3548_v24 }
 0x855   :  { %3187 = vmatprep.subr.bf16.mxu0 %v3566_v31 }
 0x858   :  { %3189 = vmatpush3.bf16.msra.mxu0 %v3566_v31 }
 0x859   :  { %2938 = vmatprep.subr.bf16.mxu0 %v3382_v0 }
 0x926   :  { %v2901_v28 = vpop.f32.mrb[16].mxu0 }
 0x927   :  { %v851_v29 = vadd.f32 %v2901_v28, %v3748_v14  ;;  %v845_v30 = vpop.f32.mrb[17].mxu0 }
 0x928   :  { %v846_v33 = vadd.f32 %v3748_v14, %v845_v30 }
 0x929   :  { %858 = vrot.lane.b32.xlu1 %v851_v29, %s3386_s3 }
 0x92a   :  { %856 = vrot.lane.b32.xlu0 %v846_v33, %s3386_s3 }
 0x99b   :  { %v859_v34 = vpop.permute.xlu1 %858 }
 0x99c   :  { %v863_v35 = vadd.f32 %v859_v34, %v595_v40  ;;  %v857_v36 = vpop.permute.xlu0 %856  ;;  %v872_v40 = vsub.f32 1.0, %v3305_v59 }
 0x99d   :  { %v862_v2 = vadd.f32 %v857_v36, %v590_v43 }
 0x99e   :  { %3306 = vtanh.f32 %v863_v35 }
 0x99f   :  { %3308 = vtanh.f32 %v862_v2 }
 0x9a8   :  { %v3307_v25 = vpop.eup %3306 }
 0x9a9   :  { %v3309_v37 = vpop.eup %3308  ;;  %878 = vrot.lane.b32.xlu1 %v3307_v25, %s3386_s3 }
 0x9aa   :  { %876 = vrot.lane.b32.xlu0 %v3309_v37, %s3386_s3 }
 0xa1b   :  { %v879_v48 = vpop.permute.xlu1 %878 }
 0xa1c   :  { %v883_v43 = vmul.f32 %v879_v48, %v873_v47  ;;  %v877_v50 = vpop.permute.xlu0 %876 }
 0xa1d   :  { %v882_v53 = vmul.f32 %v877_v50, %v872_v40 }
 0xa1e   :  { %v3760_v54 = vadd.f32 %v883_v43, %v871_v49 }
 0xa1f   :  { %v3762_v55 = vadd.f32 %v882_v53, %v870_v51 }
 0xa21   :  { %v891_v56 = vpack.c.bf16 %v3760_v54, %v3762_v55 }
 0xa23   :  { %893 = vrot.lane.b32.xlu0 %v891_v56, %s3384_s18 }
 0xa95   :  { %v894_v57 = vpop.permute.xlu0 %893 }
 0xa96   :  { %v896_v1 = vsel %vm56_vm0, %v3497_v8, %v894_v57 }
 0xa97   :  { %2903 = vmatpush3.bf16.msra.mxu1 %v896_v1 }
 0xa98   :  { %3167 = vmatprep.subr.bf16.mxu1 %v3499_v9 }
 0xa9a   :  { %2905 = vmatmul.mubr.msk.bf16.vlgmr.msra.gmra.mrb[12].mxu1 %vm80_vm2, %v3772_v58 }
 0xa9b   :  { %3169 = vmatpush3.bf16.msra.mxu1 %v3499_v9 }
 0xa9c   :  { %3171 = vmatprep.subr.bf16.mxu1 %v3515_v15 }
 0xa9f   :  { %3173 = vmatpush3.bf16.msra.mxu1 %v3515_v15 }
 0xaa0   :  { %3175 = vmatprep.subr.bf16.mxu1 %v3527_v18 }
 0xaa3   :  { %3177 = vmatpush3.bf16.msra.mxu1 %v3527_v18 }
 0xaa4   :  { %3179 = vmatprep.subr.bf16.mxu1 %v3537_v21 }
 0xaa7   :  { %3181 = vmatpush3.bf16.msra.mxu1 %v3537_v21 }
 0xaa8   :  { %3191 = vmatprep.subr.bf16.mxu1 %v3593_v44 }
 0xb6d   :  { %v3785_v59 = vpop.f32.mrb[12].mxu1 }
 0xb6e   :  { %v2906_v60 = vpop.f32.mrb[13].mxu1  ;;  %2924 = vmatprep.mubr.msk.f32.mxu1 %vm140_vm3, %v3785_v59 }
 0xb6f   :  { %v3789_v61 = vpop.f32.mrb[14].mxu1 }
 0xb70   :  { %v2907_v62 = vpop.f32.mrb[15].mxu1  ;;  %2925 = vmatmul.mubr.msk.f32.vlgmr.msra.gmra.mrb[10].mxu1 %vm140_vm3, %v3789_v61 }
 0xb71   :  { %3193 = vmatpush3.bf16.msra.mxu1 %v3593_v44 }
 0xb72   :  { %3195 = vmatprep.subr.bf16.mxu1 %v3626_v63 }
 0xc43   :  { %v2926_v3 = vpop.f32.mrb[10].mxu1 }
 0xc44   :  { %v1040_v5 = vadd.f32 %v2926_v3, %v3574_v32  ;;  %v1034_v7 = vpop.f32.mrb[11].mxu1 }
 0xc45   :  { %v1035_v10 = vadd.f32 %v3574_v32, %v1034_v7 }
 0xc46   :  { %v1044_v19 = vmax.f32 %v1040_v5, 0.0 }
 0xc47   :  { %v1043_v13 = vmax.f32 %v1035_v10, 0.0 }
 0xc49   :  { %2935 = vmatprep.mubr.msk.f32.mxu0 %vm56_vm0, %v1043_v13 }
 0xc4a   :  { %2936 = vmatmul.mubr.msk.f32.vlgmr.msra.gmra.mrb[18].mxu0 %vm56_vm0, %v1044_v19 }
 0xc4b   :  { %2940 = vmatprep.mubr.msk.bf16.mxu0 %vm3383_vm1, %v3382_v0 }
 0xd1d   :  { %v2937_v20 = vpop.f32.mrb[18].mxu0 }
 0xd1e   :  { %v1121_v23 = vpop.f32.mrb[19].mxu0 }
 0xd1f   :  { %v1130_v26 = vpack.c.bf16 %v2937_v20, %v1121_v23 }
 0xd21   :  { %2939 = vmatpush3.bf16.msra.mxu0 %v1130_v26 }
 0xd22   :  { %2951 = vmatprep.subr.bf16.mxu0 %v3382_v0 }
 0xd24   :  { %2941 = vmatmul.mubr.msk.bf16.vlgmr.msra.gmra.mrb[20].mxu0 %vm80_vm2, %v3772_v58 }
 0xd25   :  { %2953 = vmatprep.mubr.msk.bf16.mxu0 %vm3383_vm1, %v3382_v0 }
 0xdf7   :  { %v1172_v28 = vpop.f32.mrb[20].mxu0 }
 0xdf8   :  { %v1173_v29 = vadd.f32 %v3600_v45, %v1172_v28  ;;  %v2942_v30 = vpop.f32.mrb[21].mxu0 }
 0xdf9   :  { %v1175_v33 = vpop.f32.mrb[22].mxu0 }
 0xdfa   :  { %1708 = vst.msk [vmem:[#allocation3 + $0x10] sm:$0xff] %vm80_vm2, %v1173_v29  ;;  %v1176_v34 = vadd.f32 %v3600_v45, %v1175_v33  ;;  %v2943_v35 = vpop.f32.mrb[23].mxu0  ;;  %2948 = vmatprep.mubr.msk.f32.mxu1 %vm80_vm2, %v1173_v29 }
 0xdfc   :  { %1709 = vst.msk [vmem:[#allocation3 + $0x18] sm:$0xff] %vm80_vm2, %v1176_v34  ;;  %2949 = vmatmul.mubr.msk.f32.vlgmr.msra.gmra.mrb[16].mxu1 %vm80_vm2, %v1176_v34 }
 0xdfd   :  { %3197 = vmatpush3.bf16.msra.mxu1 %v3626_v63 }
 0xdfe   :  { %3199 = vmatprep.subr.bf16.mxu1 %v3631_v4 }
 0xe01   :  { %3201 = vmatpush3.bf16.msra.mxu1 %v3631_v4 }
 0xe02   :  { %3203 = vmatprep.subr.bf16.mxu1 %v3650_v12 }
 0xe05   :  { %3205 = vmatpush3.bf16.msra.mxu1 %v3650_v12 }
 0xe06   :  { %3207 = vmatprep.subr.bf16.mxu1 %v3662_v17 }
 0xe09   :  { %3209 = vmatpush3.bf16.msra.mxu1 %v3662_v17 }
 0xe0a   :  { %3004 = vmatprep.subr.bf16.mxu1 %v3382_v0 }
 0xecf   :  { %v2950_v36 = vpop.f32.mrb[16].mxu1 }
 0xed0   :  { %v1266_v2 = vadd.f32 %v2950_v36, %v3611_v52  ;;  %v1260_v25 = vpop.f32.mrb[17].mxu1 }
 0xed1   :  { %v1261_v37 = vadd.f32 %v3611_v52, %v1260_v25 }
 0xed2   :  { %v1270_v39 = vmax.f32 %v1266_v2, 0.0 }
 0xed3   :  { %v1269_v41 = vmax.f32 %v1261_v37, 0.0 }
 0xed5   :  { %v1271_v46 = vpack.c.bf16 %v1270_v39, %v1269_v41 }
 0xed7   :  { %2952 = vmatpush3.bf16.msra.mxu0 %v1271_v46 }
 0xed8   :  { %3211 = vmatprep.subr.bf16.mxu0 %v3647_v11 }
 0xeda   :  { %2954 = vmatmul.mubr.msk.bf16.vlgmr.msra.gmra.mrb[24].mxu0 %vm80_vm2, %v3772_v58 }
 0xedb   :  { %3213 = vmatpush3.bf16.msra.mxu0 %v3647_v11 }
 0xedc   :  { %3215 = vmatprep.subr.bf16.mxu0 %v3674_v22 }
 0xedf   :  { %3217 = vmatpush3.bf16.msra.mxu0 %v3674_v22 }
 0xee0   :  { %2987 = vmatprep.subr.bf16.mxu0 %v3382_v0 }
 0xfad   :  { %v1306_v47 = vpop.f32.mrb[24].mxu0 }
 0xfae   :  { %1315 = vrot.lane.b32.xlu1 %v1306_v47, %s3384_s18  ;;  %v2955_v48 = vpop.f32.mrb[25].mxu0 }
 0xfaf   :  { %v1309_v40 = vpop.f32.mrb[26].mxu0 }
 0xfb0   :  { %1317 = vrot.lane.b32.xlu0 %v1309_v40, %s3384_s18  ;;  %v2956_v49 = vpop.f32.mrb[27].mxu0 }
 0xfb2   :  { %1430 = vrot.lane.b32.xlu1 %v3785_v59, %s3385_s26 }
 0xfb4   :  { %1432 = vrot.lane.b32.xlu0 %v3789_v61, %s3385_s26 }
 0xfb6   :  { %1529 = vrot.lane.b32.xlu1 %v3762_v55, %s3384_s18 }
 0xfb8   :  { %1531 = vrot.lane.b32.xlu0 %v3760_v54, %s3384_s18 }
0x1020   :  { %v1316_v43 = vpop.permute.xlu1 %1315 }
0x1021   :  { %v1321_v50 = vsel %vm56_vm0, %v3785_v59, %v1316_v43 }
0x1022   :  { %2973 = vmatprep.mubr.msk.f32.mxu1 %vm140_vm3, %v1321_v50  ;;  %v1318_v51 = vpop.permute.xlu0 %1317 }
0x1023   :  { %v1322_v53 = vsel %vm56_vm0, %v3789_v61, %v1318_v51 }
0x1024   :  { %v1431_v56 = vpop.permute.xlu1 %1430  ;;  %2974 = vmatmul.mubr.msk.f32.vlgmr.msra.gmra.mrb[18].mxu1 %vm140_vm3, %v1322_v53  ;;  %v1690_v53 = vrot.slane %v3762_v55, %v3756_v42 }
0x1025   :  { %2984 = vmatprep.mubr.msk.f32.mxu0 %vm56_vm0, %v1431_v56  ;;  %3006 = vmatprep.mubr.msk.bf16.mxu1 %vm3383_vm1, %v3382_v0 }
0x1026   :  { %v1433_v57 = vpop.permute.xlu0 %1432 }
0x1027   :  { %2985 = vmatmul.mubr.msk.f32.vlgmr.msra.gmra.mrb[28].mxu0 %vm56_vm0, %v1433_v57 }
0x1028   :  { %2989 = vmatprep.mubr.msk.bf16.mxu0 %vm3383_vm1, %v3382_v0  ;;  %v1530_v34 = vpop.permute.xlu1 %1529 }
0x102a   :  { %v1532_v30 = vpop.permute.xlu0 %1531 }
0x10f7   :  { %v2975_v54 = vpop.f32.mrb[18].mxu1 }
0x10f8   :  { %v1410_v1 = vpop.f32.mrb[19].mxu1  ;;  %v1416_v60 = vadd.f32 %v2975_v54, %v3704_v27 }
0x10f9   :  { %v1411_v3 = vadd.f32 %v3704_v27, %v1410_v1 }
0x10fa   :  { %v2986_v59 = vpop.f32.mrb[28].mxu0 }
0x10fb   :  { %v1510_v61 = vadd.f32 %v2986_v59, %v3709_v38  ;;  %v1504_v62 = vpop.f32.mrb[29].mxu0 }
0x10fc   :  { %v1505_v5 = vadd.f32 %v3709_v38, %v1504_v62 }
0x10fd   :  { %v1514_v7 = vadd.f32 %v1510_v61, %v1416_v60 }
0x10fe   :  { %v1513_v10 = vadd.f32 %v1505_v5, %v1411_v3 }
0x10ff   :  { %v2618_v13 = vmul.f32 -1.442695, %v1514_v7 }
0x1100   :  { %v2617_v19 = vmul.f32 -1.442695, %v1513_v10 }
0x1101   :  { %3310 = vpow2.f32 %v2618_v13  ;;  %v3889_v13 = vld [vmem:[%s4025_s0 + $0x10] sm:$0xff]   ;;  %s3387_s0 = smov [#allocation3]  }
0x1102   :  { %3312 = vpow2.f32 %v2617_v19 }
0x110b   :  { %v3311_v20 = vpop.eup %3310 }
0x110c   :  { %v3313_v23 = vpop.eup %3312  ;;  %v1522_v26 = vadd.f32 1.0, %v3311_v20 }
0x110d   :  { %v1521_v28 = vadd.f32 1.0, %v3313_v23 }
0x110e   :  { %3314 = vrcp.f32 %v1522_v26 }
0x110f   :  { %3316 = vrcp.f32 %v1521_v28 }
0x1118   :  { %v3315_v29 = vpop.eup %3314 }
0x1119   :  { %v3317_v33 = vpop.eup %3316  ;;  %v1536_v35 = vmul.f32 %v3315_v29, %v1532_v30  ;;  %v1694_v56 = vsub.f32 1.0, %v3315_v29  ;;  %v1692_v1 = vmul.f32 %v3315_v29, %v1690_v53 }
0x111a   :  { %v1535_v36 = vmul.f32 %v3317_v33, %v1530_v34  ;;  %v1693_v54 = vsub.f32 1.0, %v3317_v33 }
0x111c   :  { %v1537_v2 = vpack.c.bf16 %v1536_v35, %v1535_v36 }
0x111e   :  { %1539 = vrot.lane.b32.xlu1 %v1537_v2, %s3385_s26 }
0x1190   :  { %v1540_v25 = vpop.permute.xlu1 %1539 }
0x1191   :  { %2988 = vmatpush3.bf16.msra.mxu0 %v1540_v25 }
0x1192   :  { %3219 = vmatprep.subr.bf16.mxu0 %v3722_v6 }
0x1194   :  { %2990 = vmatmul.mubr.msk.bf16.vlgmr.msra.gmra.mrb[32].mxu0 %vm80_vm2, %v3772_v58 }
0x1195   :  { %3221 = vmatpush3.bf16.msra.mxu0 %v3722_v6 }
0x1196   :  { %3223 = vmatprep.subr.bf16.mxu0 %v3731_v16 }
0x1199   :  { %3225 = vmatpush3.bf16.msra.mxu0 %v3731_v16 }
0x119a   :  { %3243 = vmatprep.subr.bf16.mxu0 %v3548_v24 }
0x1267   :  { %v1576_v37 = vpop.f32.mrb[32].mxu0 }
0x1268   :  { %v2991_v39 = vpop.f32.mrb[33].mxu0  ;;  %3001 = vmatprep.mubr.msk.f32.mxu0 %vm56_vm0, %v1576_v37 }
0x1269   :  { %v1579_v41 = vpop.f32.mrb[34].mxu0 }
0x126a   :  { %v2992_v46 = vpop.f32.mrb[35].mxu0  ;;  %3002 = vmatmul.mubr.msk.f32.vlgmr.msra.gmra.mrb[30].mxu0 %vm56_vm0, %v1579_v41 }
0x126b   :  { %3245 = vmatpush3.bf16.msra.mxu0 %v3548_v24 }
0x126c   :  { %3247 = vmatprep.subr.bf16.mxu0 %v3566_v31 }
0x126f   :  { %3249 = vmatpush3.bf16.msra.mxu0 %v3566_v31 }
0x1270   :  { %3040 = vmatprep.subr.bf16.mxu0 %v3382_v0 }
0x133d   :  { %v3003_v58 = vpop.f32.mrb[30].mxu0 }
0x133e   :  { %v1672_v47 = vadd.f32 %v3003_v58, %v3748_v14  ;;  %v1666_v48 = vpop.f32.mrb[31].mxu0 }
0x133f   :  { %v1667_v40 = vadd.f32 %v3748_v14, %v1666_v48 }
0x1340   :  { %1679 = vrot.lane.b32.xlu1 %v1672_v47, %s3386_s3 }
0x1341   :  { %1677 = vrot.lane.b32.xlu0 %v1667_v40, %s3386_s3 }
0x13b2   :  { %v1680_v49 = vpop.permute.xlu1 %1679 }
0x13b3   :  { %v1684_v43 = vadd.f32 %v1680_v49, %v1416_v60  ;;  %v1678_v50 = vpop.permute.xlu0 %1677  ;;  %v1691_v60 = vmul.f32 %v3317_v33, %v1690_v53 }
0x13b4   :  { %v1683_v24 = vadd.f32 %v1678_v50, %v1411_v3 }
0x13b5   :  { %3318 = vtanh.f32 %v1684_v43 }
0x13b6   :  { %3320 = vtanh.f32 %v1683_v24 }
0x13bf   :  { %v3319_v51 = vpop.eup %3318 }
0x13c0   :  { %v3321_v31 = vpop.eup %3320  ;;  %1699 = vrot.lane.b32.xlu1 %v3319_v51, %s3386_s3 }
0x13c1   :  { %1697 = vrot.lane.b32.xlu0 %v3321_v31, %s3386_s3 }
0x1432   :  { %v1700_v57 = vpop.permute.xlu1 %1699 }
0x1433   :  { %v1704_v59 = vmul.f32 %v1700_v57, %v1694_v56  ;;  %v1698_v61 = vpop.permute.xlu0 %1697 }
0x1434   :  { %v1703_v62 = vmul.f32 %v1698_v61, %v1693_v54 }
0x1435   :  { %v3877_v3 = vadd.f32 %v1704_v59, %v1692_v1 }
0x1436   :  { %v3879_v5 = vadd.f32 %v1703_v62, %v1691_v60 }
0x1438   :  { %v1713_v7 = vpack.c.bf16 %v3877_v3, %v3879_v5 }
0x143a   :  { %1715 = vrot.lane.b32.xlu0 %v1713_v7, %s3384_s18 }
0x14ac   :  { %v1716_v10 = vpop.permute.xlu0 %1715 }
0x14ad   :  { %v1718_v55 = vsel %vm56_vm0, %v3497_v8, %v1716_v10 }
0x14ae   :  { %3005 = vmatpush3.bf16.msra.mxu1 %v1718_v55 }
0x14af   :  { %3227 = vmatprep.subr.bf16.mxu1 %v3499_v9 }
0x14b1   :  { %3007 = vmatmul.mubr.msk.bf16.vlgmr.msra.gmra.mrb[20].mxu1 %vm80_vm2, %v3889_v13 }
0x14b2   :  { %3229 = vmatpush3.bf16.msra.mxu1 %v3499_v9 }
0x14b3   :  { %3231 = vmatprep.subr.bf16.mxu1 %v3515_v15 }
0x14b6   :  { %3233 = vmatpush3.bf16.msra.mxu1 %v3515_v15 }
0x14b7   :  { %3235 = vmatprep.subr.bf16.mxu1 %v3527_v18 }
0x14ba   :  { %3237 = vmatpush3.bf16.msra.mxu1 %v3527_v18 }
0x14bb   :  { %3239 = vmatprep.subr.bf16.mxu1 %v3537_v21 }
0x14be   :  { %3241 = vmatpush3.bf16.msra.mxu1 %v3537_v21 }
0x14bf   :  { %3251 = vmatprep.subr.bf16.mxu1 %v3593_v44 }
0x1584   :  { %v3902_v8 = vpop.f32.mrb[20].mxu1 }
0x1585   :  { %v3008_v19 = vpop.f32.mrb[21].mxu1  ;;  %3026 = vmatprep.mubr.msk.f32.mxu1 %vm140_vm3, %v3902_v8 }
0x1586   :  { %v3906_v9 = vpop.f32.mrb[22].mxu1 }
0x1587   :  { %v3009_v20 = vpop.f32.mrb[23].mxu1  ;;  %3027 = vmatmul.mubr.msk.f32.vlgmr.msra.gmra.mrb[24].mxu1 %vm140_vm3, %v3906_v9 }
0x1588   :  { %3253 = vmatpush3.bf16.msra.mxu1 %v3593_v44 }
0x1589   :  { %3255 = vmatprep.subr.bf16.mxu1 %v3626_v63 }
0x165a   :  { %v3028_v15 = vpop.f32.mrb[24].mxu1 }
0x165b   :  { %v1862_v18 = vadd.f32 %v3028_v15, %v3574_v32  ;;  %v1856_v21 = vpop.f32.mrb[25].mxu1 }
0x165c   :  { %v1857_v23 = vadd.f32 %v3574_v32, %v1856_v21 }
0x165d   :  { %v1866_v28 = vmax.f32 %v1862_v18, 0.0 }
0x165e   :  { %v1865_v26 = vmax.f32 %v1857_v23, 0.0 }
0x1660   :  { %3037 = vmatprep.mubr.msk.f32.mxu0 %vm56_vm0, %v1865_v26 }
0x1661   :  { %3038 = vmatmul.mubr.msk.f32.vlgmr.msra.gmra.mrb[36].mxu0 %vm56_vm0, %v1866_v28 }
0x1662   :  { %3042 = vmatprep.mubr.msk.bf16.mxu0 %vm3383_vm1, %v3382_v0 }
0x1734   :  { %v3039_v29 = vpop.f32.mrb[36].mxu0 }
0x1735   :  { %v1943_v30 = vpop.f32.mrb[37].mxu0 }
0x1736   :  { %v1952_v44 = vpack.c.bf16 %v3039_v29, %v1943_v30 }
0x1738   :  { %3041 = vmatpush3.bf16.msra.mxu0 %v1952_v44 }
0x1739   :  { %3053 = vmatprep.subr.bf16.mxu0 %v3382_v0 }
0x173b   :  { %3043 = vmatmul.mubr.msk.bf16.vlgmr.msra.gmra.mrb[40].mxu0 %vm80_vm2, %v3889_v13 }
0x173c   :  { %3055 = vmatprep.mubr.msk.bf16.mxu0 %vm3383_vm1, %v3382_v0 }
0x180e   :  { %v1994_v32 = vpop.f32.mrb[40].mxu0 }
0x180f   :  { %v1995_v33 = vadd.f32 %v3600_v45, %v1994_v32  ;;  %v3044_v34 = vpop.f32.mrb[41].mxu0 }
0x1810   :  { %v1997_v35 = vpop.f32.mrb[42].mxu0 }
0x1811   :  { %2530 = vst.msk [vmem:[#allocation3 + $0x20] sm:$0xff] %vm80_vm2, %v1995_v33  ;;  %v1998_v36 = vadd.f32 %v3600_v45, %v1997_v35  ;;  %v3045_v2 = vpop.f32.mrb[43].mxu0  ;;  %3050 = vmatprep.mubr.msk.f32.mxu1 %vm80_vm2, %v1995_v33 }
0x1813   :  { %2531 = vst.msk [vmem:[#allocation3 + $0x28] sm:$0xff] %vm80_vm2, %v1998_v36  ;;  %3051 = vmatmul.mubr.msk.f32.vlgmr.msra.gmra.mrb[26].mxu1 %vm80_vm2, %v1998_v36 }
0x1814   :  { %3257 = vmatpush3.bf16.msra.mxu1 %v3626_v63 }
0x1815   :  { %3259 = vmatprep.subr.bf16.mxu1 %v3631_v4 }
0x1818   :  { %3261 = vmatpush3.bf16.msra.mxu1 %v3631_v4 }
0x1819   :  { %3263 = vmatprep.subr.bf16.mxu1 %v3650_v12 }
0x181c   :  { %3265 = vmatpush3.bf16.msra.mxu1 %v3650_v12 }
0x181d   :  { %3267 = vmatprep.subr.bf16.mxu1 %v3662_v17 }
0x1820   :  { %3269 = vmatpush3.bf16.msra.mxu1 %v3662_v17 }
0x18e6   :  { %v3052_v45 = vpop.f32.mrb[26].mxu1 }
0x18e7   :  { %v2088_v25 = vadd.f32 %v3052_v45, %v3611_v52  ;;  %v2082_v37 = vpop.f32.mrb[27].mxu1 }
0x18e8   :  { %v2083_v39 = vadd.f32 %v3611_v52, %v2082_v37 }
0x18e9   :  { %v2092_v41 = vmax.f32 %v2088_v25, 0.0 }
0x18ea   :  { %v2091_v63 = vmax.f32 %v2083_v39, 0.0 }
0x18ec   :  { %v2093_v46 = vpack.c.bf16 %v2092_v41, %v2091_v63 }
0x18ee   :  { %3054 = vmatpush3.bf16.msra.mxu0 %v2093_v46 }
0x18ef   :  { %3271 = vmatprep.subr.bf16.mxu0 %v3647_v11 }
0x18f1   :  { %3056 = vmatmul.mubr.msk.bf16.vlgmr.msra.gmra.mrb[44].mxu0 %vm80_vm2, %v3889_v13 }
0x18f2   :  { %3273 = vmatpush3.bf16.msra.mxu0 %v3647_v11 }
0x18f3   :  { %3275 = vmatprep.subr.bf16.mxu0 %v3674_v22 }
0x18f6   :  { %3277 = vmatpush3.bf16.msra.mxu0 %v3674_v22 }
0x18f7   :  { %3089 = vmatprep.subr.bf16.mxu0 %v3382_v0 }
0x19c4   :  { %v2128_v4 = vpop.f32.mrb[44].mxu0 }
0x19c5   :  { %2137 = vrot.lane.b32.xlu1 %v2128_v4, %s3384_s18  ;;  %v3057_v52 = vpop.f32.mrb[45].mxu0 }
0x19c6   :  { %v2131_v12 = vpop.f32.mrb[46].mxu0 }
0x19c7   :  { %2139 = vrot.lane.b32.xlu0 %v2131_v12, %s3384_s18  ;;  %v3058_v17 = vpop.f32.mrb[47].mxu0 }
0x19c9   :  { %2252 = vrot.lane.b32.xlu1 %v3902_v8, %s3385_s26 }
0x19cb   :  { %2254 = vrot.lane.b32.xlu0 %v3906_v9, %s3385_s26 }
0x19cd   :  { %2351 = vrot.lane.b32.xlu1 %v3879_v5, %s3384_s18 }
0x19cf   :  { %2353 = vrot.lane.b32.xlu0 %v3877_v3, %s3384_s18  ;;  %s2544_s18 = sshll.u32 %s3387_s0, 4  ;;  %s2545_s18 = int_to_ptr.vmem [resolvable:$true] %s2544_s18 }
0x19d0   :  { %s3334_s22 = scalar_lea.vmem %s2545_s18, 768  ;;  %p3339_p1 = scmp.lt.s32.totalorder %s2545_s18, %s2545_s18 }
0x19d1   :  { %p3335_p0 = scmp.ne.s32.totalorder %s2545_s18, %s3334_s22  ;;  %p3340_p2 = scmp.lt.s32.totalorder %s3334_s22, %s3334_s22 }
0x19d3   :  { %p3341_p3 = por %p3340_p2, %p3339_p1 }
0x19d5   :  { %p3342_p4 = pnand %p3341_p3, %p3335_p0 }
0x1a37   :  { %v2138_v11 = vpop.permute.xlu1 %2137 }
0x1a38   :  { %v2143_v22 = vsel %vm56_vm0, %v3902_v8, %v2138_v11 }
0x1a39   :  { %3075 = vmatprep.mubr.msk.f32.mxu1 %vm140_vm3, %v2143_v22  ;;  %v2140_v58 = vpop.permute.xlu0 %2139 }
0x1a3a   :  { %v2144_v47 = vsel %vm56_vm0, %v3906_v9, %v2140_v58 }
0x1a3b   :  { %v2253_v48 = vpop.permute.xlu1 %2252  ;;  %3076 = vmatmul.mubr.msk.f32.vlgmr.msra.gmra.mrb[28].mxu1 %vm140_vm3, %v2144_v47 }
0x1a3c   :  { %3086 = vmatprep.mubr.msk.f32.mxu0 %vm56_vm0, %v2253_v48 }
0x1a3d   :  { %v2255_v40 = vpop.permute.xlu0 %2254 }
0x1a3e   :  { %3087 = vmatmul.mubr.msk.f32.vlgmr.msra.gmra.mrb[38].mxu0 %vm56_vm0, %v2255_v40 }
0x1a3f   :  { %3091 = vmatprep.mubr.msk.bf16.mxu0 %vm3383_vm1, %v3382_v0  ;;  %v2352_v55 = vpop.permute.xlu1 %2351 }
0x1a41   :  { %v2354_v7 = vpop.permute.xlu0 %2353 }
0x1b0e   :  { %v3077_v49 = vpop.f32.mrb[28].mxu1 }
0x1b0f   :  { %v2232_v43 = vpop.f32.mrb[29].mxu1  ;;  %v2238_v24 = vadd.f32 %v3077_v49, %v3704_v27 }
0x1b10   :  { %v2233_v53 = vadd.f32 %v3704_v27, %v2232_v43 }
0x1b11   :  { %v3088_v50 = vpop.f32.mrb[38].mxu0 }
0x1b12   :  { %v2332_v51 = vadd.f32 %v3088_v50, %v3709_v38  ;;  %v2326_v31 = vpop.f32.mrb[39].mxu0 }
0x1b13   :  { %v2327_v56 = vadd.f32 %v3709_v38, %v2326_v31 }
0x1b14   :  { %v2336_v57 = vadd.f32 %v2332_v51, %v2238_v24 }
0x1b15   :  { %v2335_v54 = vadd.f32 %v2327_v56, %v2233_v53 }
0x1b16   :  { %v2645_v1 = vmul.f32 -1.442695, %v2336_v57 }
0x1b17   :  { %v2644_v59 = vmul.f32 -1.442695, %v2335_v54 }
0x1b18   :  { %3322 = vpow2.f32 %v2645_v1 }
0x1b19   :  { %3324 = vpow2.f32 %v2644_v59 }
0x1b22   :  { %v3323_v61 = vpop.eup %3322 }
0x1b23   :  { %v3325_v0 = vpop.eup %3324  ;;  %v2344_v60 = vadd.f32 1.0, %v3323_v61 }
0x1b24   :  { %v2343_v62 = vadd.f32 1.0, %v3325_v0 }
0x1b25   :  { %3326 = vrcp.f32 %v2344_v60 }
0x1b26   :  { %3328 = vrcp.f32 %v2343_v62 }
0x1b2f   :  { %v3327_v3 = vpop.eup %3326 }
0x1b30   :  { %v3969_v10 = vpop.eup %3328  ;;  %v2358_v27 = vmul.f32 %v3327_v3, %v2354_v7 }
0x1b31   :  { %v2357_v38 = vmul.f32 %v3969_v10, %v2352_v55 }
0x1b33   :  { %v2359_v8 = vpack.c.bf16 %v2358_v27, %v2357_v38 }
0x1b35   :  { %2361 = vrot.lane.b32.xlu1 %v2359_v8, %s3385_s26 }
0x1ba7   :  { %v2362_v19 = vpop.permute.xlu1 %2361 }
0x1ba8   :  { %3090 = vmatpush3.bf16.msra.mxu0 %v2362_v19 }
0x1ba9   :  { %3279 = vmatprep.subr.bf16.mxu0 %v3722_v6 }
0x1bab   :  { %3092 = vmatmul.mubr.msk.bf16.vlgmr.msra.gmra.mrb[48].mxu0 %vm80_vm2, %v3889_v13 }
0x1bac   :  { %3281 = vmatpush3.bf16.msra.mxu0 %v3722_v6 }
0x1bad   :  { %3283 = vmatprep.subr.bf16.mxu0 %v3731_v16 }
0x1bb0   :  { %3285 = vmatpush3.bf16.msra.mxu0 %v3731_v16 }
0x1c7e   :  { %v2398_v9 = vpop.f32.mrb[48].mxu0 }
0x1c7f   :  { %v3093_v20 = vpop.f32.mrb[49].mxu0  ;;  %3103 = vmatprep.mubr.msk.f32.mxu0 %vm56_vm0, %v2398_v9 }
0x1c80   :  { %v2401_v15 = vpop.f32.mrb[50].mxu0 }
0x1c81   :  { %3104 = vmatmul.mubr.msk.f32.vlgmr.msra.gmra.mrb[52].mxu0 %vm56_vm0, %v2401_v15  ;;  %v3094_v18 = vpop.f32.mrb[51].mxu0 }
0x1d54   :  { %v3105_v21 = vpop.f32.mrb[52].mxu0 }
0x1d55   :  { %v2494_v23 = vadd.f32 %v3105_v21, %v3748_v14  ;;  %v2488_v26 = vpop.f32.mrb[53].mxu0 }
0x1d56   :  { %v2489_v13 = vadd.f32 %v3748_v14, %v2488_v26 }
0x1d57   :  { %2501 = vrot.lane.b32.xlu1 %v2494_v23, %s3386_s3 }
0x1d58   :  { %2499 = vrot.lane.b32.xlu0 %v2489_v13, %s3386_s3 }
0x1dc9   :  { %v2502_v6 = vpop.permute.xlu1 %2501 }
0x1dca   :  { %v2506_v16 = vadd.f32 %v2502_v6, %v2238_v24  ;;  %v2500_v28 = vpop.permute.xlu0 %2499 }
0x1dcb   :  { %v2505_v29 = vadd.f32 %v2500_v28, %v2233_v53 }
0x1dcc   :  { %3330 = vtanh.f32 %v2506_v16 }
0x1dcd   :  { %3332 = vtanh.f32 %v2505_v29 }
0x1dce   :  { %3345 = shalt.err (!%p3342_p4)
}
0x1dcf   :  { %s3346_s24 = scalar_lea.hbm %s4039_s14, 768 }
0x1dd0   :  { %p3347_p5 = scmp.ne.s32.totalorder %s4039_s14, %s3346_s24  ;;  %p3350_p6 = scmp.lt.u32.totalorder %s3346_s24, %s4039_s14 }
0x1dd2   :  { %p3352_p7 = pnand %p3350_p6, %p3347_p5 }
0x1dd4   :  { %3355 = shalt.err (!%p3352_p7)
}
0x1dd5   :  { %s3388_s10 = smov 128   ;;  %s3389_s7 = smov 8   ;;  %v2512_v44 = vrot.slane %v3879_v5, %v3756_v42  ;;  %v2516_v32 = vsub.f32 1.0, %v3327_v3  ;;  %v2515_v34 = vsub.f32 1.0, %v3969_v10 }
0x1dd6   :  { %2550 = dma.vmem_to_hbm [thread:$0]  %s2545_s18, 768, %s4039_s14, [#allocation4], %s3388_s10, %s3388_s10, %s3389_s7   ;;  %v3331_v14 = vpop.eup %3330 }
0x1dd7   :  { %v3333_v30 = vpop.eup %3332  ;;  %2521 = vrot.lane.b32.xlu1 %v3331_v14, %s3386_s3  ;;  %v2514_v35 = vmul.f32 %v3327_v3, %v2512_v44  ;;  %s3390_s9 = smov [#allocation5]   ;;  %v2513_v45 = vmul.f32 %v3969_v10, %v2512_v44 }
0x1dd8   :  { %2519 = vrot.lane.b32.xlu0 %v3333_v30, %s3386_s3  ;;  %s2556_s11 = sshll.u32 %s3390_s9, 4  ;;  %s2557_s11 = int_to_ptr.vmem [resolvable:$true] %s2556_s11 }
0x1dd9   :  { %s3356_s14 = scalar_lea.vmem %s2557_s11, 256  ;;  %p3361_p9 = scmp.lt.s32.totalorder %s2557_s11, %s2557_s11 }
0x1dda   :  { %p3357_p8 = scmp.ne.s32.totalorder %s2557_s11, %s3356_s14  ;;  %p3362_p10 = scmp.lt.s32.totalorder %s3356_s14, %s3356_s14 }
0x1ddc   :  { %p3363_p11 = por %p3362_p10, %p3361_p9 }
0x1dde   :  { %p3364_p12 = pnand %p3363_p11, %p3357_p8 }
0x1e49   :  { %v2522_v33 = vpop.permute.xlu1 %2521 }
0x1e4a   :  { %v2526_v36 = vmul.f32 %v2522_v33, %v2516_v32  ;;  %v2520_v2 = vpop.permute.xlu0 %2519 }
0x1e4b   :  { %v2525_v25 = vmul.f32 %v2520_v2, %v2515_v34 }
0x1e4c   :  { %v2528_v37 = vadd.f32 %v2526_v36, %v2514_v35 }
0x1e4d   :  { %v2527_v39 = vadd.f32 %v2525_v25, %v2513_v45 }
0x1e4e   :  { %2533 = vst.msk [vmem:[#allocation2 + $0x8] sm:$0xff] %vm56_vm0, %v2528_v37  ;;  %2538 = vst.msk [vmem:[#allocation5 + $0x8] sm:$0xff] %vm56_vm0, %v2528_v37 }
0x1e4f   :  { %2532 = vst.msk [vmem:[#allocation2] sm:$0xff] %vm56_vm0, %v2527_v39  ;;  %2537 = vst.msk [vmem:[#allocation5] sm:$0xff] %vm56_vm0, %v2527_v39 }
0x1e50   :  { %3367 = shalt.err (!%p3364_p12)
}
0x1e51   :  { %s3368_s30 = scalar_lea.hbm %s4040_s15, 256 }
0x1e52   :  { %p3369_p13 = scmp.ne.s32.totalorder %s4040_s15, %s3368_s30  ;;  %p3372_p0 = scmp.lt.u32.totalorder %s3368_s30, %s4040_s15 }
0x1e54   :  { %p3374_p1 = pnand %p3372_p0, %p3369_p13 }
0x1e56   :  { %3377 = shalt.err (!%p3374_p1)
}
0x1e57   :  { %2562 = dma.vmem_to_hbm [thread:$0]  %s2557_s11, 256, %s4040_s15, [#allocation6], %s3388_s10, %s3388_s10, %s3389_s7  }
0x1e58   :  { %3378 = dma.done.wait [#allocation4], 768  }
0x1e59   :  { %3379 = vsyncadd [#allocation4], 4294966528 }
0x1e5a   :  { %3380 = dma.done.wait [#allocation6], 256  }
0x1e5b   :  { %3381 = vsyncadd [#allocation6], 4294967040 }
0x1e5c   :  { %2569 = vsyncpa [#allocation4], 1 }
0x1e5d   :  { %2570 = vsyncpa [#allocation6], 1 }

</bundles_post_ra>
